<compile_context>
chip_gen: v6e
topology: v6e:2x2x1
jax: 0.10.0
libtpu: 0.0.40
codegen_flags: <defaults>
</compile_context>

<pallas_src>
import numpy as np
import jax
import jax.numpy as jnp
from jax.experimental import pallas as pl
from jax.experimental.pallas import tpu as pltpu

C = 256        # fixed by the module's Conv2d(256, 256, 1) / BatchNorm2d(256)
NBINS = 21     # 1 + 4 + 16 pyramid bins
NPAD = 32      # bins padded to 32 for lane-friendly shapes


# ---------------------------------------------------------------------------
# Host-side helper matrices (exact PyTorch semantics)
# ---------------------------------------------------------------------------
def adaptive_pool_matrix(out_size, in_size):
    """Rows of averaging weights reproducing nn.AdaptiveAvgPool2d bins (1D)."""
    P = np.zeros((out_size, in_size), np.float32)
    for o in range(out_size):
        start = (o * in_size) // out_size
        end = -((-(o + 1) * in_size) // out_size)  # ceil
        P[o, start:end] = 1.0 / (end - start)
    return P


def bilinear_matrix(out_size, in_size):
    """1D bilinear-interp weights, F.interpolate(..., align_corners=False)."""
    B = np.zeros((out_size, in_size), np.float32)
    scale = in_size / out_size
    for o in range(out_size):
        src = (o + 0.5) * scale - 0.5
        if src < 0.0:
            src = 0.0
        i0 = min(int(np.floor(src)), in_size - 1)
        i1 = min(i0 + 1, in_size - 1)
        l1 = src - i0
        B[o, i0] += 1.0 - l1
        B[o, i1] += l1
    return B


# ---------------------------------------------------------------------------
# Pallas kernel: one batch element per grid step, (C, HW) orientation
# ---------------------------------------------------------------------------
def psa_kernel(x_ref, pT_ref, uT_ref, w1_ref, w2_ref, w4_ref,
               m1_ref, m2_ref, m4_ref, shift_ref, o_ref):
    x = x_ref[0]                                   # (C, HW) f32
    xb = x.astype(jnp.bfloat16)

    # Fused pyramid pooling: one (C,HW)@(HW,32) matmul.  Columns 0 / 1:5 / 5:21
    # hold the 1x1 / 2x2 / 4x4 bins; columns 21:32 are zero padding.
    pool = jnp.dot(xb, pT_ref[...],
                   preferred_element_type=jnp.float32).astype(jnp.bfloat16)

    # Three 1x1 convs (BN scale + conv bias pre-folded into weights / shift).
    # Level selection via cheap VPU masks keeps every matmul at full M=K=256.
    f = (jnp.dot(w1_ref[...], pool * m1_ref[...], preferred_element_type=jnp.float32)
         + jnp.dot(w2_ref[...], pool * m2_ref[...], preferred_element_type=jnp.float32)
         + jnp.dot(w4_ref[...], pool * m4_ref[...], preferred_element_type=jnp.float32))
    f = jnp.maximum(f + shift_ref[...], 0.0).astype(jnp.bfloat16)   # (C, 32)

    # Fused bilinear upsample (incl. the 1x1 constant broadcast): one
    # (C,32)@(32,HW) matmul back to full resolution.
    attn_pre = jnp.dot(f, uT_ref[...], preferred_element_type=jnp.float32)  # (C, HW)

    o_ref[0] = (x * jax.nn.sigmoid(attn_pre)).astype(o_ref.dtype)


# ---------------------------------------------------------------------------
# Wrapper
# ---------------------------------------------------------------------------
def pyramid_spatial_attention(x_nchw, params):
    N, Cc, H, W = x_nchw.shape
    assert Cc == C
    HW = H * W

    # NCHW -> (N, C, HW): a free view, no transpose, no extra HBM traffic.
    x = x_nchw.reshape(N, C, HW)

    # --- fused pooling matrix (HW, NPAD) ---
    P_cat = np.zeros((NPAD, HW), np.float32)
    P_cat[0, :] = 1.0 / HW                                                   # 1x1 pool
    P_cat[1:5, :] = np.kron(adaptive_pool_matrix(2, H), adaptive_pool_matrix(2, W))
    P_cat[5:21, :] = np.kron(adaptive_pool_matrix(4, H), adaptive_pool_matrix(4, W))
    pT = jnp.asarray(P_cat.T, dtype=jnp.bfloat16)                            # (HW, 32)

    # --- fused upsampling matrix (NPAD, HW) ---
    U_cat = np.zeros((NPAD, HW), np.float32)
    U_cat[0, :] = 1.0   # bilinear upsample of a 1x1 map == constant broadcast
    U_cat[1:5, :] = np.kron(bilinear_matrix(H, 2), bilinear_matrix(W, 2)).T
    U_cat[5:21, :] = np.kron(bilinear_matrix(H, 4), bilinear_matrix(W, 4)).T
    uT = jnp.asarray(U_cat, dtype=jnp.bfloat16)                              # (32, HW)

    # --- per-level bin-selection masks (full size to avoid broadcasts) ---
    m1 = np.zeros((C, NPAD), np.float32); m1[:, 0] = 1.0
    m2 = np.zeros((C, NPAD), np.float32); m2[:, 1:5] = 1.0
    m4 = np.zeros((C, NPAD), np.float32); m4[:, 5:21] = 1.0
    m1, m2, m4 = (jnp.asarray(m, dtype=jnp.bfloat16) for m in (m1, m2, m4))

    # --- fold BN (inference) + conv bias into weights / per-bin shift ---
    eps = 1e-5
    bns = params["bn_gamma"] / jnp.sqrt(params["bn_var"] + eps)   # (C,)
    bnb = params["bn_beta"] - params["bn_mean"] * bns             # (C,)

    def fold_w(w):   # torch layout (C_out, C_in): scale each output channel row
        return (w * bns[:, None]).astype(jnp.bfloat16)

    w1 = fold_w(params["w1"])
    w2 = fold_w(params["w2"])
    w4 = fold_w(params["w4"])

    def fold_shift(b):
        return (bns * b + bnb)[:, None]                           # (C, 1)

    shift = jnp.concatenate(
        [fold_shift(params["b1"]),
         jnp.tile(fold_shift(params["b2"]), (1, 4)),
         jnp.tile(fold_shift(params["b4"]), (1, 16)),
         jnp.zeros((C, NPAD - NBINS), jnp.float32)], axis=1)      # (C, 32) f32

    def full(shape):
        return pl.BlockSpec(shape, lambda n, _nd=len(shape): (0,) * _nd)

    out = pl.pallas_call(
        psa_kernel,
        out_shape=jax.ShapeDtypeStruct((N, C, HW), x.dtype),
        grid_spec=pltpu.PrefetchScalarGridSpec(
            num_scalar_prefetch=0,
            grid=(N,),
            in_specs=[
                pl.BlockSpec((1, C, HW), lambda n: (n, 0, 0)),      # x (NCHW view)
                full((HW, NPAD)),                                   # fused pooling
                full((NPAD, HW)),                                   # fused upsample
                full((C, C)), full((C, C)), full((C, C)),           # folded conv weights
                full((C, NPAD)), full((C, NPAD)), full((C, NPAD)),  # level masks
                full((C, NPAD)),                                    # folded bias/BN shift
            ],
            out_specs=pl.BlockSpec((1, C, HW), lambda n: (n, 0, 0)),
        ),
        compiler_params=pltpu.CompilerParams(
            # batch axis is fully independent -> shard across v7x's two TCs
            dimension_semantics=("parallel",)),
    )(x, pT, uT, w1, w2, w4, m1, m2, m4, shift)

    # (N, C, HW) -> NCHW (free view)
    return out.reshape(N, C, H, W)


# ---------------------------------------------------------------------------
# Pure-JAX f32 reference (same math, no Pallas) for a wiring sanity check.
# Note: shares the pool/interp helper matrices with the kernel; an independent
#       torch comparison would additionally validate the PyTorch semantics.
# ---------------------------------------------------------------------------
def reference(x_nchw, params):
    N, Cc, H, W = x_nchw.shape
    HW = H * W
    xf = x_nchw.reshape(N, Cc, HW).astype(jnp.float32)

    P2 = jnp.asarray(np.kron(adaptive_pool_matrix(2, H), adaptive_pool_matrix(2, W)))
    P4 = jnp.asarray(np.kron(adaptive_pool_matrix(4, H), adaptive_pool_matrix(4, W)))
    U2 = jnp.asarray(np.kron(bilinear_matrix(H, 2), bilinear_matrix(W, 2)))
    U4 = jnp.asarray(np.kron(bilinear_matrix(H, 4), bilinear_matrix(W, 4)))

    eps = 1e-5
    bns = params["bn_gamma"] / jnp.sqrt(params["bn_var"] + eps)
    bnb = params["bn_beta"] - params["bn_mean"] * bns

    def branch(p, w, b):                       # p: (N, C, n_bins)
        y = jnp.einsum("oc,ncb->nob", w, p) + b[None, :, None]
        y = y * bns[None, :, None] + bnb[None, :, None]
        return jnp.maximum(y, 0.0)

    pool1 = jnp.mean(xf, axis=2, keepdims=True)        # (N, C, 1)
    pool2 = jnp.einsum("ncp,bp->ncb", xf, P2)          # (N, C, 4)
    pool4 = jnp.einsum("ncp,bp->ncb", xf, P4)          # (N, C, 16)

    f1 = branch(pool1, params["w1"], params["b1"])
    f2 = branch(pool2, params["w2"], params["b2"])
    f4 = branch(pool4, params["w4"], params["b4"])

    up2 = jnp.einsum("ncb,pb->ncp", f2, U2)            # (N, C, HW)
    up4 = jnp.einsum("ncb,pb->ncp", f4, U4)
    attn = jax.nn.sigmoid(f1 + up2 + up4)              # f1 (N,C,1) broadcasts over HW
    return (xf * attn).reshape(N, Cc, H, W)


if __name__ == "__main__":
    N, H, W = 2, 16, 16
    key = jax.random.PRNGKey(0)
    ks = jax.random.split(key, 12)

    x = jax.random.normal(ks[0], (N, C, H, W), jnp.float32)

    params = {
        "w1": 0.05 * jax.random.normal(ks[1], (C, C), jnp.float32),
        "w2": 0.05 * jax.random.normal(ks[2], (C, C), jnp.float32),
        "w4": 0.05 * jax.random.normal(ks[3], (C, C), jnp.float32),
        "b1": 0.1 * jax.random.normal(ks[4], (C,), jnp.float32),
        "b2": 0.1 * jax.random.normal(ks[5], (C,), jnp.float32),
        "b4": 0.1 * jax.random.normal(ks[6], (C,), jnp.float32),
        "bn_gamma": 1.0 + 0.1 * jax.random.normal(ks[7], (C,), jnp.float32),
        "bn_beta": 0.1 * jax.random.normal(ks[8], (C,), jnp.float32),
        "bn_mean": 0.05 * jax.random.normal(ks[9], (C,), jnp.float32),
        "bn_var": 1.0 + 0.1 * jnp.abs(jax.random.normal(ks[10], (C,), jnp.float32)),
    }

    out = pyramid_spatial_attention(x, params)
    out = jax.block_until_ready(out)

    ref = jax.block_until_ready(reference(x, params))
    # bf16 MXU operands (f32 accumulation) -> compare against the f32 reference
    # with a correspondingly looser tolerance.
    np.testing.assert_allclose(np.asarray(out), np.asarray(ref), rtol=2e-2, atol=2e-2)

    print("KERNEL_OK")
</pallas_src>

<mosaic_0001>
module attributes {stable_mosaic.version = 11 : i64} {
  func.func @psa_kernel(%arg0: i32, %arg1: memref<1x256x256xf32, #tpu.memory_space<vmem>>, %arg2: memref<256x32xbf16, #tpu.memory_space<vmem>>, %arg3: memref<32x256xbf16, #tpu.memory_space<vmem>>, %arg4: memref<256x256xbf16, #tpu.memory_space<vmem>>, %arg5: memref<256x256xbf16, #tpu.memory_space<vmem>>, %arg6: memref<256x256xbf16, #tpu.memory_space<vmem>>, %arg7: memref<256x32xbf16, #tpu.memory_space<vmem>>, %arg8: memref<256x32xbf16, #tpu.memory_space<vmem>>, %arg9: memref<256x32xbf16, #tpu.memory_space<vmem>>, %arg10: memref<256x32xf32, #tpu.memory_space<vmem>>, %arg11: memref<1x256x256xf32, #tpu.memory_space<vmem>>) attributes {dimension_semantics = [#tpu.dimension_semantics<parallel>], iteration_bounds = array<i64: 2>, scalar_prefetch = 0 : i64, scratch_operands = 0 : i64, tpu.core_type = #tpu.core_type<tc>, window_params = [{transform_indices = @transform_0, window_bounds = array<i64: 1, 256, 256>}, {pipeline_mode = #tpu.pipeline_mode<synchronous>, transform_indices = @transform_1, window_bounds = array<i64: 256, 32>}, {pipeline_mode = #tpu.pipeline_mode<synchronous>, transform_indices = @transform_2, window_bounds = array<i64: 32, 256>}, {pipeline_mode = #tpu.pipeline_mode<synchronous>, transform_indices = @transform_3, window_bounds = array<i64: 256, 256>}, {pipeline_mode = #tpu.pipeline_mode<synchronous>, transform_indices = @transform_4, window_bounds = array<i64: 256, 256>}, {pipeline_mode = #tpu.pipeline_mode<synchronous>, transform_indices = @transform_5, window_bounds = array<i64: 256, 256>}, {pipeline_mode = #tpu.pipeline_mode<synchronous>, transform_indices = @transform_6, window_bounds = array<i64: 256, 32>}, {pipeline_mode = #tpu.pipeline_mode<synchronous>, transform_indices = @transform_7, window_bounds = array<i64: 256, 32>}, {pipeline_mode = #tpu.pipeline_mode<synchronous>, transform_indices = @transform_8, window_bounds = array<i64: 256, 32>}, {pipeline_mode = #tpu.pipeline_mode<synchronous>, transform_indices = @transform_9, window_bounds = array<i64: 256, 32>}, {transform_indices = @transform_10, window_bounds = array<i64: 1, 256, 256>}]} {
    %c0 = arith.constant 0 : index
    %c0_0 = arith.constant 0 : index
    %c0_1 = arith.constant 0 : index
    %0 = vector.load %arg1[%c0, %c0_0, %c0_1] : memref<1x256x256xf32, #tpu.memory_space<vmem>>, vector<1x256x256xf32>
    %1 = vector.shape_cast %0 : vector<1x256x256xf32> to vector<256x256xf32>
    %2 = arith.truncf %1 : vector<256x256xf32> to vector<256x256xbf16>
    %c0_2 = arith.constant 0 : index
    %c0_3 = arith.constant 0 : index
    %3 = vector.load %arg2[%c0_2, %c0_3] : memref<256x32xbf16, #tpu.memory_space<vmem>>, vector<256x32xbf16>
    %cst = arith.constant dense<0.000000e+00> : vector<256x32xf32>
    %4 = tpu.matmul %2, %3, %cst {dimension_numbers = #tpu.dot_dimension_numbers<[1], [0], [0], [1], [0, 0, 1, 1], [], []>} : vector<256x256xbf16>, vector<256x32xbf16>, vector<256x32xf32> -> vector<256x32xf32>
    %5 = arith.truncf %4 : vector<256x32xf32> to vector<256x32xbf16>
    %c0_4 = arith.constant 0 : index
    %c0_5 = arith.constant 0 : index
    %6 = vector.load %arg4[%c0_4, %c0_5] : memref<256x256xbf16, #tpu.memory_space<vmem>>, vector<256x256xbf16>
    %c0_6 = arith.constant 0 : index
    %c0_7 = arith.constant 0 : index
    %7 = vector.load %arg7[%c0_6, %c0_7] : memref<256x32xbf16, #tpu.memory_space<vmem>>, vector<256x32xbf16>
    %8 = arith.mulf %5, %7 : vector<256x32xbf16>
    %cst_8 = arith.constant dense<0.000000e+00> : vector<256x32xf32>
    %9 = tpu.matmul %6, %8, %cst_8 {dimension_numbers = #tpu.dot_dimension_numbers<[1], [0], [0], [1], [0, 0, 1, 1], [], []>} : vector<256x256xbf16>, vector<256x32xbf16>, vector<256x32xf32> -> vector<256x32xf32>
    %c0_9 = arith.constant 0 : index
    %c0_10 = arith.constant 0 : index
    %10 = vector.load %arg5[%c0_9, %c0_10] : memref<256x256xbf16, #tpu.memory_space<vmem>>, vector<256x256xbf16>
    %c0_11 = arith.constant 0 : index
    %c0_12 = arith.constant 0 : index
    %11 = vector.load %arg8[%c0_11, %c0_12] : memref<256x32xbf16, #tpu.memory_space<vmem>>, vector<256x32xbf16>
    %12 = arith.mulf %5, %11 : vector<256x32xbf16>
    %cst_13 = arith.constant dense<0.000000e+00> : vector<256x32xf32>
    %13 = tpu.matmul %10, %12, %cst_13 {dimension_numbers = #tpu.dot_dimension_numbers<[1], [0], [0], [1], [0, 0, 1, 1], [], []>} : vector<256x256xbf16>, vector<256x32xbf16>, vector<256x32xf32> -> vector<256x32xf32>
    %14 = arith.addf %9, %13 : vector<256x32xf32>
    %c0_14 = arith.constant 0 : index
    %c0_15 = arith.constant 0 : index
    %15 = vector.load %arg6[%c0_14, %c0_15] : memref<256x256xbf16, #tpu.memory_space<vmem>>, vector<256x256xbf16>
    %c0_16 = arith.constant 0 : index
    %c0_17 = arith.constant 0 : index
    %16 = vector.load %arg9[%c0_16, %c0_17] : memref<256x32xbf16, #tpu.memory_space<vmem>>, vector<256x32xbf16>
    %17 = arith.mulf %5, %16 : vector<256x32xbf16>
    %cst_18 = arith.constant dense<0.000000e+00> : vector<256x32xf32>
    %18 = tpu.matmul %15, %17, %cst_18 {dimension_numbers = #tpu.dot_dimension_numbers<[1], [0], [0], [1], [0, 0, 1, 1], [], []>} : vector<256x256xbf16>, vector<256x32xbf16>, vector<256x32xf32> -> vector<256x32xf32>
    %19 = arith.addf %14, %18 : vector<256x32xf32>
    %c0_19 = arith.constant 0 : index
    %c0_20 = arith.constant 0 : index
    %20 = vector.load %arg10[%c0_19, %c0_20] : memref<256x32xf32, #tpu.memory_space<vmem>>, vector<256x32xf32>
    %21 = arith.addf %19, %20 : vector<256x32xf32>
    %cst_21 = arith.constant 0.000000e+00 : f32
    %22 = vector.broadcast %cst_21 : f32 to vector<256x32xf32>
    %23 = arith.maximumf %21, %22 : vector<256x32xf32>
    %24 = arith.truncf %23 : vector<256x32xf32> to vector<256x32xbf16>
    %c0_22 = arith.constant 0 : index
    %c0_23 = arith.constant 0 : index
    %25 = vector.load %arg3[%c0_22, %c0_23] : memref<32x256xbf16, #tpu.memory_space<vmem>>, vector<32x256xbf16>
    %cst_24 = arith.constant dense<0.000000e+00> : vector<256x256xf32>
    %26 = tpu.matmul %24, %25, %cst_24 {dimension_numbers = #tpu.dot_dimension_numbers<[1], [0], [0], [1], [0, 0, 1, 1], [], []>} : vector<256x32xbf16>, vector<32x256xbf16>, vector<256x256xf32> -> vector<256x256xf32>
    %27 = arith.negf %26 : vector<256x256xf32>
    %28 = math.exp %27 : vector<256x256xf32>
    %cst_25 = arith.constant 1.000000e+00 : f32
    %29 = vector.broadcast %cst_25 : f32 to vector<256x256xf32>
    %30 = arith.addf %29, %28 : vector<256x256xf32>
    %31 = arith.divf %29, %30 : vector<256x256xf32>
    %32 = arith.mulf %1, %31 : vector<256x256xf32>
    %c0_26 = arith.constant 0 : index
    %c0_27 = arith.constant 0 : index
    %c0_28 = arith.constant 0 : index
    %33 = vector.load %arg11[%c0_26, %c0_27, %c0_28] : memref<1x256x256xf32, #tpu.memory_space<vmem>>, vector<1x256x256xf32>
    %34 = vector.shape_cast %33 : vector<1x256x256xf32> to vector<256x256xf32>
    %35 = vector.shape_cast %32 : vector<256x256xf32> to vector<1x256x256xf32>
    tpu.vector_store %arg11[%c0_26, %c0_27, %c0_28], %35 {strides = array<i32>} : memref<1x256x256xf32, #tpu.memory_space<vmem>>, vector<1x256x256xf32>,
    return
  }
  func.func @transform_0(%arg0: i32) -> (i32, i32, i32) {
    %c0_i32 = arith.constant 0 : i32
    %c0_i32_0 = arith.constant 0 : i32
    %c0_i32_1 = arith.constant 0 : i32
    return %arg0, %c0_i32, %c0_i32_0 : i32, i32, i32
  }
  func.func @transform_1(%arg0: i32) -> (i32, i32) {
    %c0_i32 = arith.constant 0 : i32
    %c0_i32_0 = arith.constant 0 : i32
    %c0_i32_1 = arith.constant 0 : i32
    return %c0_i32, %c0_i32_0 : i32, i32
  }
  func.func @transform_2(%arg0: i32) -> (i32, i32) {
    %c0_i32 = arith.constant 0 : i32
    %c0_i32_0 = arith.constant 0 : i32
    %c0_i32_1 = arith.constant 0 : i32
    return %c0_i32, %c0_i32_0 : i32, i32
  }
  func.func @transform_3(%arg0: i32) -> (i32, i32) {
    %c0_i32 = arith.constant 0 : i32
    %c0_i32_0 = arith.constant 0 : i32
    %c0_i32_1 = arith.constant 0 : i32
    return %c0_i32, %c0_i32_0 : i32, i32
  }
  func.func @transform_4(%arg0: i32) -> (i32, i32) {
    %c0_i32 = arith.constant 0 : i32
    %c0_i32_0 = arith.constant 0 : i32
    %c0_i32_1 = arith.constant 0 : i32
    return %c0_i32, %c0_i32_0 : i32, i32
  }
  func.func @transform_5(%arg0: i32) -> (i32, i32) {
    %c0_i32 = arith.constant 0 : i32
    %c0_i32_0 = arith.constant 0 : i32
    %c0_i32_1 = arith.constant 0 : i32
    return %c0_i32, %c0_i32_0 : i32, i32
  }
  func.func @transform_6(%arg0: i32) -> (i32, i32) {
    %c0_i32 = arith.constant 0 : i32
    %c0_i32_0 = arith.constant 0 : i32
    %c0_i32_1 = arith.constant 0 : i32
    return %c0_i32, %c0_i32_0 : i32, i32
  }
  func.func @transform_7(%arg0: i32) -> (i32, i32) {
    %c0_i32 = arith.constant 0 : i32
    %c0_i32_0 = arith.constant 0 : i32
    %c0_i32_1 = arith.constant 0 : i32
    return %c0_i32, %c0_i32_0 : i32, i32
  }
  func.func @transform_8(%arg0: i32) -> (i32, i32) {
    %c0_i32 = arith.constant 0 : i32
    %c0_i32_0 = arith.constant 0 : i32
    %c0_i32_1 = arith.constant 0 : i32
    return %c0_i32, %c0_i32_0 : i32, i32
  }
  func.func @transform_9(%arg0: i32) -> (i32, i32) {
    %c0_i32 = arith.constant 0 : i32
    %c0_i32_0 = arith.constant 0 : i32
    %c0_i32_1 = arith.constant 0 : i32
    return %c0_i32, %c0_i32_0 : i32, i32
  }
  func.func @transform_10(%arg0: i32) -> (i32, i32, i32) {
    %c0_i32 = arith.constant 0 : i32
    %c0_i32_0 = arith.constant 0 : i32
    %c0_i32_1 = arith.constant 0 : i32
    return %arg0, %c0_i32, %c0_i32_0 : i32, i32, i32
  }
}

</mosaic_0001>

<bundles_post_ra>
// kernel: tpu_custom_call.1
= control target key start
LH: loop header
LB: loop body
LE: loop exit
PB: predicated region body
PF: predicated region fallthrough
CT: control target
= control target key end

     0   :  { %15 = vsyncpa [#allocation3], 0  ;;  %s6124_s0 = inlined_call_operand.hbm [shape: f32[2,256,256], index: 0, kind: input, shape index: {}]   ;;  %s6125_s1 = inlined_call_operand.vmem [shape: bf16[256,32], index: 1, kind: input, shape index: {}]   ;;  %s6126_s2 = inlined_call_operand.vmem [shape: bf16[32,256], index: 2, kind: input, shape index: {}]   ;;  %s6127_s3 = inlined_call_operand.vmem [shape: bf16[256,256], index: 3, kind: input, shape index: {}]   ;;  %s6128_s4 = inlined_call_operand.vmem [shape: bf16[256,256], index: 4, kind: input, shape index: {}]   ;;  %s6129_s5 = inlined_call_operand.vmem [shape: bf16[256,256], index: 5, kind: input, shape index: {}]   ;;  %s6130_s6 = inlined_call_operand.vmem [shape: bf16[256,32], index: 6, kind: input, shape index: {}]   ;;  %s6131_s7 = inlined_call_operand.vmem [shape: bf16[256,32], index: 7, kind: input, shape index: {}]   ;;  %s6132_s8 = inlined_call_operand.vmem [shape: bf16[256,32], index: 8, kind: input, shape index: {}]   ;;  %s6133_s9 = inlined_call_operand.vmem [shape: f32[256,32], index: 9, kind: input, shape index: {}]   ;;  %s6134_s10 = inlined_call_operand.hbm [shape: f32[2,256,256], index: 10, kind: output, shape index: {}]  }
   0x1   :  { %17 = vsyncpa [#allocation3 + $0x1], 0 }
   0x2   :  { %18 = vsyncpa [#allocation4], 0 }
   0x3   :  { %20 = vsyncpa [#allocation4 + $0x1], 0  ;;  %s4745_s13 = smov 0   ;;  %s4747_s14 = smov 0  }
   0x4   :  { %s4749_s15 = smov 0   ;;  %s4751_s16 = smov 0  }
   0x5 LB: > { %6142 = sst [smem:[#allocation8_spill]] %s4677_s15  ;;  %s4766_s17 = sadd.s32 4294967295, %s4681_s16   ;;  %s4681_s16 = sphi %s4751_s16, %s6187_s16   ;;  %s4677_s15 = sphi %s4749_s15, %s6189_s15   ;;  %s4673_s14 = sphi %s4747_s14, %s6191_s14   ;;  %s4669_s13 = sphi %s4745_s13, %s6190_s13  }
   0x6   : > { %s3280_s18 = sadd.s32 4294967294, %s4681_s16   ;;  %s4770_s19 = sadd.s32 1, %s4681_s16  }
   0x7   : > { %6143 = sst [smem:[#allocation9_spill]] %s4770_s19  ;;  %s33_s20 = sadd.s32 1, %s4677_s15 }
   0x8   : > { %s30_s21 = ssub.s32 %s4681_s16, %s4770_s19  ;;  %p40_p0 = scmp.ne.s32.totalorder %s4677_s15, %s4673_s14 }
   0x9   : > { %p31_p1 = scmp.eq.s32.totalorder %s30_s21, 0  ;;  %p41_p2 = scmp.eq.s32.totalorder %s4681_s16, 0 }
   0xa   : > { %p46_p3 = scmp.ne.s32.totalorder %s4673_s14, %s4669_s13  ;;  %p47_p4 = scmp.eq.s32.totalorder %s4766_s17, 0 }
   0xb   : > { %s4782_s22 = scalar_select %p31_p1, %s4677_s15, %s33_s20  }
   0xc   : > { %p4784_p5 = por %p41_p2, %p40_p0  ;;  %p4788_p6 = por %p47_p4, %p46_p3 }
   0xd   : > { %6144 = sst [smem:[#allocation10_spill]] %s4782_s22  ;;  %p259_p7 = scmp.eq.s32.totalorder %s4766_s17, 1 }
   0xe   : > { %s6146_s24 = scalar_select %p4788_p6, 1, 0 }
   0xf   : > { %p265_p8 = scmp.eq.s32.totalorder %s3280_s18, 1  ;;  %p4016_p10 = scmp.lt.s32.totalorder %s4681_s16, 2 }
  0x10   : > { %p4795_p11 = por %p259_p7, %p40_p0  ;;  %s312_s27 = sand.u32 1, %s4677_s15  }
  0x11   : > { %p4799_p12 = por %p265_p8, %p46_p3  ;;  %s3538_s28 = sshll.u32 %s4681_s16, 13 }
  0x12   : > { %s6147_s25 = scalar_select %p4795_p11, 1, 0 }
  0x13   : > { %s6148_s26 = scalar_select %p4799_p12, 1, 0 }
  0x14   : > { %s3283_s29 = sshll.u32 %s312_s27, 9  ;;  %s4808_s12 = scalar_lea.hbm %s6124_s0, %s3538_s28 }
  0x15   : > { %s316_s18 = scalar_lea.vmem [#allocation2], %s3283_s29  ;;  %p4812_p13 = pnand %p4016_p10, %p4784_p5 }
  0x16   : > { %s323_s20 = sshll.u32 %s316_s18, 4  ;;  %s4818_s22 = scalar_lea.sflag [#allocation3], %s312_s27  ;;  %s4816_s20 = int_to_ptr.vmem [resolvable:$true] %s323_s20 }
  0x17   : > { %s4589_s15 = scalar_lea.hbm %s4808_s12, 8192  ;;  %p4591_p1 = pneg %p4812_p13 }
  0x18   : > { %p4590_p0 = scmp.ne.s32.totalorder %s4808_s12, %s4589_s15  ;;  %s4594_s29 = scalar_lea.hbm %s6124_s0, 16384 }
  0x19   : > { %p4595_p4 = scmp.lt.s32.totalorder %s4808_s12, %s6124_s0  ;;  %p4596_p5 = scmp.lt.s32.totalorder %s4594_s29, %s4589_s15 }
  0x1a   : > { %p4592_p2 = pnand %p4591_p1, %p4590_p0 }
  0x1b   : > { %p4597_p7 = por %p4596_p5, %p4595_p4 }
  0x1c   : > { %p4593_p3 = pneg %p4592_p2 }
  0x1e   : > { %p4598_p8 = pnand %p4597_p7, %p4593_p3 }
  0x20   : > { %4601 = shalt.err (!%p4598_p8)
}
  0x21   : > { %s4602_s27 = scalar_lea.vmem %s4816_s20, 8192  ;;  %s4683_s18 = smov [#allocation2]  }
  0x22   : > { %p4603_p10 = scmp.ne.s32.totalorder %s4816_s20, %s4602_s27  ;;  %s4607_s19 = sshll.u32 %s4683_s18, 4  ;;  %s4608_s19 = int_to_ptr.vmem [resolvable:$false] %s4607_s19 }
  0x23   : > { %s4609_s28 = scalar_lea.vmem %s4608_s19, 16384  ;;  %p4610_p2 = scmp.lt.s32.totalorder %s4816_s20, %s4608_s19 }
  0x24   : > { %p4605_p9 = pnand %p4603_p10, %p4591_p1  ;;  %p4611_p12 = scmp.lt.s32.totalorder %s4609_s28, %s4602_s27 }
  0x26   : > { %p4606_p0 = pneg %p4605_p9  ;;  %p4612_p11 = por %p4611_p12, %p4610_p2 }
  0x28   : > { %p4613_p6 = pnand %p4612_p11, %p4606_p0 }
  0x2a   : > { %4616 = shalt.err (!%p4613_p6)
}
  0x2b   : > { %s4684_s15 = smov 256   ;;  %s4685_s30 = smov 16  }
  0x2c   : > { %4011 = dma.hbm_to_vmem [thread:$0]  (!%p4812_p13), %s4808_s12, 8192, %s4816_s20, %s4818_s22, %s4684_s15, %s4684_s15, %s4685_s30  }
  0x2d   : > { %p3286_p9 = scmp.ge.s32.totalorder %s4681_s16, 1  ;;  %p331_p1 = scmp.lt.s32.totalorder %s4681_s16, 3 }
  0x2f   : > { %p332_p3 = pnand %p3286_p9, %p331_p1 }
  0x31   : > { %335 = sbr.rel (%p332_p3) target bundleno = 1089 (0x441), region = 60 }
  0x36   : > { %s4842_s19 = sand.u32 1, %s4673_s14   ;;  %p6150_p6 = scmp.ne.s32.totalorder %s6146_s24, 0 }
  0x37   : > { %s3287_s29 = sshll.u32 %s4842_s19, 9  ;;  %s338_s23 = scalar_lea.sflag [#allocation3], %s4842_s19 }
  0x38   : > { %s4848_s11 = scalar_lea.vmem [#allocation2], %s3287_s29 }
  0x39   : > { %4660 = dma.done.wait (%p6150_p6), %s338_s23, 8192  }
  0x3a   : > { %4662 = vsyncadd (%p6150_p6), %s338_s23, 4294959104  ;;  %v4055_v0 = vld [vmem:[%s6125_s1 + $0x78] sm:$0xff]   ;;  %v4057_v2 = vld [vmem:[%s6125_s1 + $0x70] sm:$0xff]   ;;  %vm2439_vm0 = vcmask 261120   ;;  %s5945_s15 = scalar_lea.vmem [#allocation5], %s3287_s29  ;;  %s3539_s29 = sshll.u32 %s4766_s17, 13 }
  0x3b   : > { %v4056_v1 = vld [vmem:[%s6125_s1 + $0x38] sm:$0xff]   ;;  %3540 = vmatprep.subr.bf16.mxu0 %v4055_v0  ;;  %3988 = vmatprep.subr.bf16.mxu1 %v4055_v0  ;;  %v4058_v3 = vld [vmem:[%s6125_s1 + $0x30] sm:$0xff]   ;;  %v4059_v4 = vld [vmem:[%s6125_s1 + $0x68] sm:$0xff]   ;;  %s3207_s24 = sshll.u32 %s5945_s15, 4  ;;  %s6076_s22 = scalar_lea.hbm %s6134_s10, %s3539_s29  ;;  %s6078_s24 = int_to_ptr.vmem [resolvable:$true] %s3207_s24 }
  0x3c   : > { %3541 = vmatpush3.bf16.msra.mxu0 %v4056_v1  ;;  %3996 = vmatpush3.bf16.msra.mxu1 %v4056_v1  ;;  %v4060_v5 = vld [vmem:[%s6125_s1 + $0x28] sm:$0xff]   ;;  %v4061_v6 = vld [vmem:[%s6125_s1 + $0x60] sm:$0xff]   ;;  %v4063_v8 = vld [vmem:[%s6125_s1 + $0x58] sm:$0xff]   ;;  %s3194_s17 = scalar_lea.sflag [#allocation4], %s4842_s19  ;;  %s4617_s12 = scalar_lea.vmem %s6078_s24, 8192 }
  0x3d   : > { %3542 = vmatprep.subr.bf16.mxu0 %v4057_v2  ;;  %3989 = vmatprep.subr.bf16.mxu1 %v4057_v2  ;;  %v4062_v7 = vld [vmem:[%s6125_s1 + $0x20] sm:$0xff]   ;;  %v4064_v9 = vld [vmem:[%s6125_s1 + $0x18] sm:$0xff]   ;;  %v4065_v10 = vld [vmem:[%s6125_s1 + $0x50] sm:$0xff]   ;;  %p4618_p11 = scmp.ne.s32.totalorder %s6078_s24, %s4617_s12  ;;  %p6184_p12 = scmp.ne.s32.totalorder %s6147_s25, 0 }
  0x3e   : > { %v380_v11 = vld [vmem:[%s4848_s11 + $0x8] sm:$0xff]  ;;  %v382_v12 = vld [vmem:[%s4848_s11 + $0x18] sm:$0xff]  ;;  %v4066_v17 = vld [vmem:[%s6125_s1 + $0x10] sm:$0xff]   ;;  %s4687_s20 = smov [#allocation5]  }
  0x3f   : > { %v412_v13 = vld [vmem:[%s4848_s11 + $0x108] sm:$0xff]  ;;  %v444_v14 = vpack.c.bf16 %v382_v12, %v380_v11  ;;  %v414_v15 = vld [vmem:[%s4848_s11 + $0x118] sm:$0xff]  ;;  %v4069_v20 = vld [vmem:[%s6125_s1 + $0x40] sm:$0xff]   ;;  %p4619_p13 = pnand %p4618_p11, %p6184_p12  ;;  %s4621_s21 = sshll.u32 %s4687_s20, 4  ;;  %s4622_s21 = int_to_ptr.vmem [resolvable:$false] %s4621_s21 }
  0x40   : > { %3543 = vmatpush3.bf16.msra.mxu0 %v4058_v3  ;;  %3997 = vmatpush3.bf16.msra.mxu1 %v4058_v3  ;;  %v460_v16 = vpack.c.bf16 %v414_v15, %v412_v13  ;;  %v4067_v18 = vld [vmem:[%s6125_s1 + $0x48] sm:$0xff]   ;;  %v4070_v21 = vld [vmem:[%s6125_s1] sm:$0xff]   ;;  %v381_v23 = vld [vmem:[%s4848_s11 + $0x10] sm:$0xff]  ;;  %s4623_s27 = scalar_lea.vmem %s4622_s21, 16384  ;;  %p4624_p5 = scmp.lt.s32.totalorder %s6078_s24, %s4622_s21 }
  0x41   : > { %3544 = vmatprep.subr.bf16.mxu0 %v4059_v4  ;;  %3990 = vmatprep.subr.bf16.mxu1 %v4059_v4  ;;  %v4068_v19 = vld [vmem:[%s6125_s1 + $0x8] sm:$0xff]   ;;  %v379_v22 = vld [vmem:[%s4848_s11] sm:$0xff]  ;;  %v413_v25 = vld [vmem:[%s4848_s11 + $0x110] sm:$0xff]  ;;  %p4620_p4 = pneg %p4619_p13  ;;  %p4625_p7 = scmp.lt.s32.totalorder %s4623_s27, %s4617_s12 }
  0x42   : > { %635 = vmatprep.mubr.bf16.mxu0 %v444_v14  ;;  %699 = vmatprep.mubr.bf16.mxu1 %v460_v16  ;;  %v411_v24 = vld [vmem:[%s4848_s11 + $0x100] sm:$0xff]  ;;  %v384_v26 = vld [vmem:[%s4848_s11 + $0x28] sm:$0xff]  ;;  %v386_v27 = vld [vmem:[%s4848_s11 + $0x38] sm:$0xff]  ;;  %v443_v30 = vpack.c.bf16 %v381_v23, %v379_v22 }
  0x43   : > { %v416_v28 = vld [vmem:[%s4848_s11 + $0x128] sm:$0xff]  ;;  %v418_v29 = vld [vmem:[%s4848_s11 + $0x138] sm:$0xff]  ;;  %v459_v31 = vpack.c.bf16 %v413_v25, %v411_v24  ;;  %v446_v32 = vpack.c.bf16 %v386_v27, %v384_v26  ;;  %v383_v34 = vld [vmem:[%s4848_s11 + $0x20] sm:$0xff]  ;;  %p4626_p8 = por %p4625_p7, %p4624_p5 }
  0x44   : > { %3545 = vmatpush3.bf16.msra.mxu0 %v4060_v5  ;;  %3998 = vmatpush3.bf16.msra.mxu1 %v4060_v5  ;;  %v462_v33 = vpack.c.bf16 %v418_v29, %v416_v28  ;;  %v385_v35 = vld [vmem:[%s4848_s11 + $0x30] sm:$0xff]  ;;  %v415_v36 = vld [vmem:[%s4848_s11 + $0x120] sm:$0xff]  ;;  %v388_v38 = vld [vmem:[%s4848_s11 + $0x48] sm:$0xff] }
  0x45   : > { %3546 = vmatprep.subr.bf16.mxu0 %v4061_v6  ;;  %3991 = vmatprep.subr.bf16.mxu1 %v4061_v6  ;;  %v417_v37 = vld [vmem:[%s4848_s11 + $0x130] sm:$0xff]  ;;  %v390_v39 = vld [vmem:[%s4848_s11 + $0x58] sm:$0xff]  ;;  %v420_v40 = vld [vmem:[%s4848_s11 + $0x148] sm:$0xff]  ;;  %v445_v42 = vpack.c.bf16 %v385_v35, %v383_v34  ;;  %p4627_p10 = pnand %p4626_p8, %p4620_p4 }
  0x46   : > { %v422_v41 = vld [vmem:[%s4848_s11 + $0x158] sm:$0xff]  ;;  %v461_v43 = vpack.c.bf16 %v417_v37, %v415_v36  ;;  %v448_v44 = vpack.c.bf16 %v390_v39, %v388_v38  ;;  %v387_v46 = vld [vmem:[%s4848_s11 + $0x40] sm:$0xff]  ;;  %v389_v47 = vld [vmem:[%s4848_s11 + $0x50] sm:$0xff] }
  0x47   : > { %v464_v45 = vpack.c.bf16 %v422_v41, %v420_v40  ;;  %v419_v48 = vld [vmem:[%s4848_s11 + $0x140] sm:$0xff]  ;;  %v421_v49 = vld [vmem:[%s4848_s11 + $0x150] sm:$0xff]  ;;  %v392_v50 = vld [vmem:[%s4848_s11 + $0x68] sm:$0xff]  ;;  %v447_v54 = vpack.c.bf16 %v389_v47, %v387_v46 }
  0x48   : > { %3547 = vmatpush3.bf16.msra.mxu0 %v4062_v7  ;;  %3999 = vmatpush3.bf16.msra.mxu1 %v4062_v7  ;;  %v394_v51 = vld [vmem:[%s4848_s11 + $0x78] sm:$0xff]  ;;  %v424_v52 = vld [vmem:[%s4848_s11 + $0x168] sm:$0xff]  ;;  %v463_v55 = vpack.c.bf16 %v421_v49, %v419_v48  ;;  %v391_v58 = vld [vmem:[%s4848_s11 + $0x60] sm:$0xff] }
  0x49   : > { %3548 = vmatprep.subr.bf16.mxu0 %v4063_v8  ;;  %3992 = vmatprep.subr.bf16.mxu1 %v4063_v8  ;;  %v426_v53 = vld [vmem:[%s4848_s11 + $0x178] sm:$0xff]  ;;  %v450_v56 = vpack.c.bf16 %v394_v51, %v392_v50  ;;  %v393_v59 = vld [vmem:[%s4848_s11 + $0x70] sm:$0xff]  ;;  %v423_v60 = vld [vmem:[%s4848_s11 + $0x160] sm:$0xff] }
  0x4a   : > { %v466_v57 = vpack.c.bf16 %v426_v53, %v424_v52  ;;  %v425_v61 = vld [vmem:[%s4848_s11 + $0x170] sm:$0xff]  ;;  %v396_v62 = vld [vmem:[%s4848_s11 + $0x88] sm:$0xff]  ;;  %v398_v63 = vld [vmem:[%s4848_s11 + $0x98] sm:$0xff]  ;;  %v449_v2 = vpack.c.bf16 %v393_v59, %v391_v58 }
  0x4b   : > { %v428_v0 = vld [vmem:[%s4848_s11 + $0x188] sm:$0xff]  ;;  %v430_v1 = vld [vmem:[%s4848_s11 + $0x198] sm:$0xff]  ;;  %v465_v3 = vpack.c.bf16 %v425_v61, %v423_v60  ;;  %v452_v4 = vpack.c.bf16 %v398_v63, %v396_v62  ;;  %v395_v6 = vld [vmem:[%s4848_s11 + $0x80] sm:$0xff] }
  0x4c   : > { %3549 = vmatpush3.bf16.msra.mxu0 %v4064_v9  ;;  %4000 = vmatpush3.bf16.msra.mxu1 %v4064_v9  ;;  %v468_v5 = vpack.c.bf16 %v430_v1, %v428_v0  ;;  %v397_v7 = vld [vmem:[%s4848_s11 + $0x90] sm:$0xff]  ;;  %v427_v8 = vld [vmem:[%s4848_s11 + $0x180] sm:$0xff]  ;;  %v402_v11 = vld [vmem:[%s4848_s11 + $0xb8] sm:$0xff] }
  0x4d   : > { %3550 = vmatprep.subr.bf16.mxu0 %v4065_v10  ;;  %3993 = vmatprep.subr.bf16.mxu1 %v4065_v10  ;;  %v429_v9 = vld [vmem:[%s4848_s11 + $0x190] sm:$0xff]  ;;  %v400_v10 = vld [vmem:[%s4848_s11 + $0xa8] sm:$0xff]  ;;  %v434_v13 = vld [vmem:[%s4848_s11 + $0x1b8] sm:$0xff]  ;;  %v451_v14 = vpack.c.bf16 %v397_v7, %v395_v6 }
  0x4e   : > { %v432_v12 = vld [vmem:[%s4848_s11 + $0x1a8] sm:$0xff]  ;;  %v467_v15 = vpack.c.bf16 %v429_v9, %v427_v8  ;;  %v454_v16 = vpack.c.bf16 %v402_v11, %v400_v10  ;;  %v406_v23 = vld [vmem:[%s4848_s11 + $0xd8] sm:$0xff] }
  0x4f   : > { %v404_v22 = vld [vmem:[%s4848_s11 + $0xc8] sm:$0xff]  ;;  %v438_v25 = vld [vmem:[%s4848_s11 + $0x1d8] sm:$0xff] }
  0x50   : > { %3551 = vmatpush3.bf16.msra.mxu0 %v4066_v17  ;;  %4001 = vmatpush3.bf16.msra.mxu1 %v4066_v17  ;;  %v470_v17 = vpack.c.bf16 %v434_v13, %v432_v12  ;;  %v436_v24 = vld [vmem:[%s4848_s11 + $0x1c8] sm:$0xff]  ;;  %v456_v28 = vpack.c.bf16 %v406_v23, %v404_v22  ;;  %v410_v35 = vld [vmem:[%s4848_s11 + $0xf8] sm:$0xff] }
  0x51   : > { %3552 = vmatprep.subr.bf16.mxu0 %v4067_v18  ;;  %3994 = vmatprep.subr.bf16.mxu1 %v4067_v18  ;;  %v399_v18 = vld [vmem:[%s4848_s11 + $0xa0] sm:$0xff]  ;;  %v472_v29 = vpack.c.bf16 %v438_v25, %v436_v24  ;;  %v408_v34 = vld [vmem:[%s4848_s11 + $0xe8] sm:$0xff]  ;;  %v442_v37 = vld [vmem:[%s4848_s11 + $0x1f8] sm:$0xff] }
  0x52   : > { %v440_v36 = vld [vmem:[%s4848_s11 + $0x1e8] sm:$0xff]  ;;  %v458_v40 = vpack.c.bf16 %v410_v35, %v408_v34 }
  0x53   : > { %v474_v41 = vpack.c.bf16 %v442_v37, %v440_v36  ;;  %v4106_v48 = vld [vmem:[%s6128_s4 + $0x4] ss:$8 sps:$4 sm:$0xff]  }
  0x54   : > { %3553 = vmatpush3.bf16.msra.mxu0 %v4068_v19  ;;  %4002 = vmatpush3.bf16.msra.mxu1 %v4068_v19  ;;  %v401_v19 = vld [vmem:[%s4848_s11 + $0xb0] sm:$0xff]  ;;  %v4131_v49 = vld [vmem:[%s6127_s3 + $0x4] ss:$8 sps:$4 sm:$0xff]  }
  0x55   : > { %3554 = vmatprep.subr.bf16.mxu0 %v4069_v20  ;;  %3995 = vmatprep.subr.bf16.mxu1 %v4069_v20  ;;  %v431_v20 = vld [vmem:[%s4848_s11 + $0x1a0] sm:$0xff]  ;;  %v453_v26 = vpack.c.bf16 %v401_v19, %v399_v18 }
  0x58   : > { %3555 = vmatpush3.bf16.msra.mxu0 %v4070_v21  ;;  %4003 = vmatpush3.bf16.msra.mxu1 %v4070_v21  ;;  %v433_v21 = vld [vmem:[%s4848_s11 + $0x1b0] sm:$0xff] }
  0x59   : > { %v469_v27 = vpack.c.bf16 %v433_v21, %v431_v20 }
  0x5b   : > { %636 = vmatmul.mubr.bf16.vlgmr.msra.gmra.mxu0 %v443_v30  ;;  %700 = vmatmul.mubr.bf16.vlgmr.msra.gmra.mxu1 %v459_v31  ;;  %v403_v30 = vld [vmem:[%s4848_s11 + $0xc0] sm:$0xff]  ;;  %v405_v31 = vld [vmem:[%s4848_s11 + $0xd0] sm:$0xff] }
  0x5c   : > { %643 = vmatprep.mubr.bf16.mxu0 %v446_v32  ;;  %707 = vmatprep.mubr.bf16.mxu1 %v462_v33  ;;  %v435_v32 = vld [vmem:[%s4848_s11 + $0x1c0] sm:$0xff]  ;;  %v437_v33 = vld [vmem:[%s4848_s11 + $0x1d0] sm:$0xff]  ;;  %v455_v38 = vpack.c.bf16 %v405_v31, %v403_v30 }
  0x5d   : > { %v471_v39 = vpack.c.bf16 %v437_v33, %v435_v32 }
  0x63   : > { %644 = vmatmul.mubr.bf16.gmra.mxu0 %v445_v42  ;;  %708 = vmatmul.mubr.bf16.gmra.mxu1 %v461_v43  ;;  %v407_v42 = vld [vmem:[%s4848_s11 + $0xe0] sm:$0xff]  ;;  %v409_v43 = vld [vmem:[%s4848_s11 + $0xf0] sm:$0xff] }
  0x64   : > { %651 = vmatprep.mubr.bf16.mxu0 %v448_v44  ;;  %715 = vmatprep.mubr.bf16.mxu1 %v464_v45  ;;  %v439_v44 = vld [vmem:[%s4848_s11 + $0x1e0] sm:$0xff]  ;;  %v441_v45 = vld [vmem:[%s4848_s11 + $0x1f0] sm:$0xff]  ;;  %v457_v46 = vpack.c.bf16 %v409_v43, %v407_v42 }
  0x65   : > { %v473_v47 = vpack.c.bf16 %v441_v45, %v439_v44 }
  0x6b   : > { %652 = vmatmul.mubr.bf16.gmra.mxu0 %v447_v54  ;;  %716 = vmatmul.mubr.bf16.gmra.mxu1 %v463_v55 }
  0x6c   : > { %659 = vmatprep.mubr.bf16.mxu0 %v450_v56  ;;  %723 = vmatprep.mubr.bf16.mxu1 %v466_v57 }
  0x73   : > { %660 = vmatmul.mubr.bf16.gmra.mxu0 %v449_v2  ;;  %724 = vmatmul.mubr.bf16.gmra.mxu1 %v465_v3 }
  0x74   : > { %667 = vmatprep.mubr.bf16.mxu0 %v452_v4  ;;  %731 = vmatprep.mubr.bf16.mxu1 %v468_v5 }
  0x7b   : > { %668 = vmatmul.mubr.bf16.gmra.mxu0 %v451_v14  ;;  %732 = vmatmul.mubr.bf16.gmra.mxu1 %v467_v15 }
  0x7c   : > { %675 = vmatprep.mubr.bf16.mxu0 %v454_v16  ;;  %739 = vmatprep.mubr.bf16.mxu1 %v470_v17 }
  0x83   : > { %676 = vmatmul.mubr.bf16.gmra.mxu0 %v453_v26  ;;  %740 = vmatmul.mubr.bf16.gmra.mxu1 %v469_v27 }
  0x84   : > { %683 = vmatprep.mubr.bf16.mxu0 %v456_v28  ;;  %747 = vmatprep.mubr.bf16.mxu1 %v472_v29 }
  0x8b   : > { %684 = vmatmul.mubr.bf16.gmra.mxu0 %v455_v38  ;;  %748 = vmatmul.mubr.bf16.gmra.mxu1 %v471_v39 }
  0x8c   : > { %691 = vmatprep.mubr.bf16.mxu0 %v458_v40  ;;  %755 = vmatprep.mubr.bf16.mxu1 %v474_v41 }
  0x93   : > { %692 = vmatmul.mubr.bf16.gmra.mxu0 %v457_v46  ;;  %756 = vmatmul.mubr.bf16.gmra.mxu1 %v473_v47 }
  0x94   : > { %1324 = vmatprep.mubr.bf16.mxu1 %v4106_v48  ;;  %1645 = vmatprep.mubr.bf16.mxu0 %v4131_v49 }
 0x11b   : > { %v3556_v50 = vpop.f32.mrf.mxu0  ;;  %v3604_v51 = vpop.f32.mrf.mxu1 }
 0x11d   : > { %v3557_v52 = vpop.f32.mrf.mxu0  ;;  %v3605_v53 = vpop.f32.mrf.mxu1 }
 0x11e   : > { %v3558_v54 = vadd.f32 %v3557_v52, %v3556_v50  ;;  %v3606_v55 = vadd.f32 %v3605_v53, %v3604_v51 }
 0x11f   : > { %v3559_v56 = vpop.f32.mrf.mxu0  ;;  %v3607_v57 = vpop.f32.mrf.mxu1 }
 0x121   : > { %v3560_v58 = vpop.f32.mrf.mxu0  ;;  %v3608_v59 = vpop.f32.mrf.mxu1 }
 0x122   : > { %v3561_v60 = vadd.f32 %v3560_v58, %v3559_v56  ;;  %v3609_v61 = vadd.f32 %v3608_v59, %v3607_v57 }
 0x123   : > { %v3562_v62 = vpop.f32.mrf.mxu0  ;;  %v3610_v63 = vpop.f32.mrf.mxu1 }
 0x124   : > { %v4972_v0 = vpack.c.bf16 %v3561_v60, %v3558_v54  ;;  %v4974_v1 = vpack.c.bf16 %v3609_v61, %v3606_v55 }
 0x125   : > { %v3563_v2 = vpop.f32.mrf.mxu0  ;;  %v3611_v3 = vpop.f32.mrf.mxu1 }
 0x126   : > { %v3564_v4 = vadd.f32 %v3563_v2, %v3562_v62  ;;  %v3612_v5 = vadd.f32 %v3611_v3, %v3610_v63  ;;  %v4071_v3 = vld [vmem:[%s6131_s7 + $0x78] sm:$0xff]  }
 0x127   : > { %v3565_v6 = vpop.f32.mrf.mxu0  ;;  %v3613_v7 = vpop.f32.mrf.mxu1 }
 0x129   : > { %v3566_v8 = vpop.f32.mrf.mxu0  ;;  %v3614_v9 = vpop.f32.mrf.mxu1 }
 0x12a   : > { %v3567_v10 = vadd.f32 %v3566_v8, %v3565_v6  ;;  %v3615_v11 = vadd.f32 %v3614_v9, %v3613_v7  ;;  %v4072_v8 = vld [vmem:[%s6130_s6 + $0x78] sm:$0xff]  }
 0x12b   : > { %v3568_v12 = vpop.f32.mrf.mxu0  ;;  %v4976_v13 = vpop.f32.mrf.mxu1  ;;  %v4073_v9 = vld [vmem:[%s6131_s7 + $0x38] sm:$0xff]  }
 0x12c   : > { %v4978_v14 = vpack.c.bf16 %v3567_v10, %v3564_v4  ;;  %v4980_v15 = vpack.c.bf16 %v3615_v11, %v3612_v5  ;;  %v4074_v10 = vld [vmem:[%s6130_s6 + $0x38] sm:$0xff]  }
 0x12d   : > { %v3569_v16 = vpop.f32.mrf.mxu0  ;;  %v4982_v17 = vpop.f32.mrf.mxu1 }
 0x12e   : > { %v4984_v18 = vadd.f32 %v3569_v16, %v3568_v12 }
 0x12f   : > { %v4986_v19 = vpop.f32.mrf.mxu0  ;;  %v4988_v20 = vpop.f32.mrf.mxu1 }
 0x131   : > { %v4990_v21 = vpop.f32.mrf.mxu0  ;;  %v4992_v22 = vpop.f32.mrf.mxu1 }
 0x133   : > { %v4994_v23 = vpop.f32.mrf.mxu0  ;;  %v4996_v24 = vpop.f32.mrf.mxu1 }
 0x135   : > { %v4998_v25 = vpop.f32.mrf.mxu0  ;;  %v5000_v26 = vpop.f32.mrf.mxu1 }
 0x137   : > { %v5002_v27 = vpop.f32.mrf.mxu0  ;;  %v5004_v28 = vpop.f32.mrf.mxu1 }
 0x139   : > { %v5006_v29 = vpop.f32.mrf.mxu0  ;;  %v5008_v30 = vpop.f32.mrf.mxu1 }
 0x13b   : > { %v5010_v31 = vpop.f32.mrf.mxu0  ;;  %v5012_v32 = vpop.f32.mrf.mxu1 }
 0x13d   : > { %v5014_v33 = vpop.f32.mrf.mxu0  ;;  %v5016_v34 = vpop.f32.mrf.mxu1 }
 0x13f   : > { %v5018_v35 = vpop.f32.mrf.mxu0  ;;  %v3631_v36 = vpop.f32.mrf.mxu1 }
 0x141   : > { %v5020_v37 = vpop.f32.mrf.mxu0  ;;  %v3632_v38 = vpop.f32.mrf.mxu1 }
 0x143   : > { %v3586_v39 = vpop.f32.mrf.mxu0  ;;  %v3634_v40 = vpop.f32.mrf.mxu1 }
 0x145   : > { %v3587_v41 = vpop.f32.mrf.mxu0  ;;  %v3635_v42 = vpop.f32.mrf.mxu1 }
 0x147   : > { %v3589_v43 = vpop.f32.mrf.mxu0  ;;  %v3637_v44 = vpop.f32.mrf.mxu1 }
 0x149   : > { %v3590_v45 = vpop.f32.mrf.mxu0  ;;  %v3638_v46 = vpop.f32.mrf.mxu1 }
 0x14a   : > { %v3639_v12 = vadd.f32 %v3638_v46, %v3637_v44 }
 0x14b   : > { %v3592_v47 = vpop.f32.mrf.mxu0  ;;  %v3640_v48 = vpop.f32.mrf.mxu1 }
 0x14d   : > { %v3593_v49 = vpop.f32.mrf.mxu0  ;;  %v3641_v50 = vpop.f32.mrf.mxu1 }
 0x14e   : > { %v3642_v62 = vadd.f32 %v3641_v50, %v3640_v48 }
 0x14f   : > { %v3595_v51 = vpop.f32.mrf.mxu0  ;;  %v3643_v52 = vpop.f32.mrf.mxu1 }
 0x151   : > { %v3596_v53 = vpop.f32.mrf.mxu0  ;;  %v3644_v54 = vpop.f32.mrf.mxu1 }
 0x152   : > { %v3645_v61 = vadd.f32 %v3644_v54, %v3643_v52  ;;  %v3597_v11 = vadd.f32 %v3596_v53, %v3595_v51  ;;  %v4075_v52 = vld [vmem:[%s6131_s7 + $0x70] sm:$0xff]   ;;  %v3633_v53 = vadd.f32 %v3632_v38, %v3631_v36  ;;  %v4079_v36 = vld [vmem:[%s6131_s7 + $0x68] sm:$0xff]  }
 0x153   : > { %v3598_v55 = vpop.f32.mrf.mxu0  ;;  %v3646_v56 = vpop.f32.mrf.mxu1  ;;  %v4076_v54 = vld [vmem:[%s6130_s6 + $0x70] sm:$0xff]   ;;  %v4080_v38 = vld [vmem:[%s6130_s6 + $0x68] sm:$0xff]  }
 0x154   : > { %v5034_v16 = vpack.c.bf16 %v3645_v61, %v3642_v62  ;;  %v3585_v61 = vadd.f32 %v5020_v37, %v5018_v35 }
 0x155   : > { %v3599_v57 = vpop.f32.mrf.mxu0  ;;  %v3647_v58 = vpop.f32.mrf.mxu1 }
 0x156   : > { %v3600_v4 = vadd.f32 %v3599_v57, %v3598_v55  ;;  %v3648_v5 = vadd.f32 %v3647_v58, %v3646_v56  ;;  %v3636_v55 = vadd.f32 %v3635_v42, %v3634_v40  ;;  %v3594_v56 = vadd.f32 %v3593_v49, %v3592_v47  ;;  %v4078_v40 = vld [vmem:[%s6130_s6 + $0x30] sm:$0xff]  }
 0x157   : > { %v3601_v59 = vpop.f32.mrf.mxu0  ;;  %v3649_v60 = vpop.f32.mrf.mxu1  ;;  %v3591_v58 = vadd.f32 %v3590_v45, %v3589_v43  ;;  %v1130_v47 = vmul.bf16 %v4075_v52, %v5034_v16  ;;  %v954_v49 = vmul.bf16 %v4076_v54, %v5034_v16  ;;  %v3588_v43 = vadd.f32 %v3587_v41, %v3586_v39  ;;  %v4081_v39 = vld [vmem:[%s6131_s7 + $0x28] sm:$0xff]  }
 0x158   : > { %v5058_v42 = vpack.c.bf16 %v3639_v12, %v3636_v55  ;;  %v3630_v45 = vadd.f32 %v5016_v34, %v5012_v32  ;;  %v4082_v41 = vld [vmem:[%s6130_s6 + $0x28] sm:$0xff]   ;;  %v3627_v32 = vadd.f32 %v5008_v30, %v5004_v28  ;;  %v3624_v28 = vadd.f32 %v5000_v26, %v4996_v24  ;;  %v4092_v55 = vld [vmem:[%s6130_s6 + $0x50] sm:$0xff]  }
 0x159   : > { %v3602_v63 = vpop.f32.mrf.mxu0  ;;  %v3650_v2 = vpop.f32.mrf.mxu1  ;;  %v5072_v62 = vpack.c.bf16 %v3591_v58, %v3588_v43  ;;  %v3579_v30 = vadd.f32 %v5006_v29, %v5002_v27  ;;  %v3621_v24 = vadd.f32 %v4992_v22, %v4988_v20  ;;  %v3618_v20 = vadd.f32 %v4982_v17, %v4976_v13 }
 0x15a   : > { %v3603_v6 = vadd.f32 %v3602_v63, %v3601_v59  ;;  %v3651_v7 = vadd.f32 %v3650_v2, %v3649_v60  ;;  %v5050_v59 = vpack.c.bf16 %v3597_v11, %v3594_v56  ;;  %v4077_v60 = vld [vmem:[%s6131_s7 + $0x30] sm:$0xff]   ;;  %v5084_v34 = vpack.c.bf16 %v3633_v53, %v3630_v45  ;;  %v4099_v45 = vld [vmem:[%s6131_s7 + $0x40] sm:$0xff]  }
 0x15b   : > { %v1129_v35 = vmul.bf16 %v4079_v36, %v5058_v42  ;;  %v953_v37 = vmul.bf16 %v4080_v38, %v5058_v42  ;;  %v5112_v26 = vpack.c.bf16 %v3627_v32, %v3624_v28  ;;  %v3576_v11 = vadd.f32 %v4998_v25, %v4994_v23  ;;  %v4089_v23 = vld [vmem:[%s6131_s7 + $0x18] sm:$0xff]   ;;  %v4098_v36 = vld [vmem:[%s6130_s6 + $0x8] sm:$0xff]  }
 0x15c   : > { %v5036_v48 = vpack.c.bf16 %v3603_v6, %v3600_v4  ;;  %v5038_v50 = vpack.c.bf16 %v3651_v7, %v3648_v5  ;;  %v1122_v63 = vmul.bf16 %v4077_v60, %v5050_v59  ;;  %v946_v2 = vmul.bf16 %v4078_v40, %v5050_v59  ;;  %v4084_v4 = vld [vmem:[%s6130_s6 + $0x60] sm:$0xff]   ;;  %v4090_v25 = vld [vmem:[%s6130_s6 + $0x18] sm:$0xff]   ;;  %v4096_v60 = vld [vmem:[%s6130_s6 + $0x48] sm:$0xff]  }
 0x15d   : > { %v3582_v5 = vadd.f32 %v5014_v33, %v5010_v31  ;;  %v1121_v7 = vmul.bf16 %v4081_v39, %v5072_v62  ;;  %v4085_v31 = vld [vmem:[%s6131_s7 + $0x20] sm:$0xff]   ;;  %v952_v29 = vmul.bf16 %v4084_v4, %v5084_v34  ;;  %v3573_v22 = vadd.f32 %v4990_v21, %v4986_v19  ;;  %v4091_v21 = vld [vmem:[%s6131_s7 + $0x50] sm:$0xff]  }
 0x15e   : > { %v1131_v57 = vmul.bf16 %v4071_v3, %v5038_v50  ;;  %v955_v44 = vmul.bf16 %v4072_v8, %v5038_v50  ;;  %v1123_v46 = vmul.bf16 %v4073_v9, %v5036_v48  ;;  %v947_v51 = vmul.bf16 %v4074_v10, %v5036_v48  ;;  %v4083_v3 = vld [vmem:[%s6131_s7 + $0x60] sm:$0xff]   ;;  %v4087_v9 = vld [vmem:[%s6131_s7 + $0x58] sm:$0xff]  }
 0x15f   : > { %v5100_v6 = vpack.c.bf16 %v3585_v61, %v3582_v5  ;;  %v945_v8 = vmul.bf16 %v4082_v41, %v5072_v62  ;;  %v4086_v33 = vld [vmem:[%s6130_s6 + $0x20] sm:$0xff]   ;;  %v1128_v27 = vmul.bf16 %v4083_v3, %v5084_v34  ;;  %v4088_v10 = vld [vmem:[%s6130_s6 + $0x58] sm:$0xff]   ;;  %v5128_v12 = vpack.c.bf16 %v3579_v30, %v3576_v11 }
 0x160   : > { %3652 = vmatprep.subr.bf16.mxu1 %v1131_v57  ;;  %3764 = vmatprep.subr.bf16.mxu0 %v955_v44  ;;  %v5138_v13 = vpack.c.bf16 %v3621_v24, %v3618_v20  ;;  %v1127_v17 = vmul.bf16 %v4087_v9, %v5112_v26  ;;  %v951_v19 = vmul.bf16 %v4088_v10, %v5112_v26  ;;  %v4100_v61 = vld [vmem:[%s6130_s6 + $0x40] sm:$0xff]   ;;  %v4107_v5 = vld [vmem:[%s6132_s8 + $0x38] sm:$0xff]   ;;  %v4109_v24 = vld [vmem:[%s6132_s8 + $0x30] sm:$0xff]  }
 0x161   : > { %3653 = vmatpush3.bf16.msra.mxu1 %v1123_v46  ;;  %3765 = vmatpush3.bf16.msra.mxu0 %v947_v51  ;;  %v1120_v52 = vmul.bf16 %v4085_v31, %v5100_v6  ;;  %v944_v54 = vmul.bf16 %v4086_v33, %v5100_v6  ;;  %v5149_v56 = vpack.c.bf16 %v3573_v22, %v4984_v18  ;;  %v4093_v46 = vld [vmem:[%s6131_s7 + $0x10] sm:$0xff]   ;;  %v4095_v18 = vld [vmem:[%s6131_s7 + $0x48] sm:$0xff]   ;;  %v4101_v39 = vld [vmem:[%s6131_s7] sm:$0xff]  }
 0x162   : > { %3654 = vmatprep.subr.bf16.mxu1 %v1130_v47  ;;  %3766 = vmatprep.subr.bf16.mxu0 %v954_v49  ;;  %v1119_v57 = vmul.bf16 %v4089_v23, %v5128_v12  ;;  %v943_v44 = vmul.bf16 %v4090_v25, %v5128_v12  ;;  %v4094_v51 = vld [vmem:[%s6130_s6 + $0x10] sm:$0xff]   ;;  %v1126_v53 = vmul.bf16 %v4091_v21, %v5138_v13  ;;  %v4097_v49 = vld [vmem:[%s6131_s7 + $0x8] sm:$0xff]   ;;  %v4102_v41 = vld [vmem:[%s6130_s6] sm:$0xff]  }
 0x163   : > { %v950_v58 = vmul.bf16 %v4092_v55, %v5138_v13  ;;  %v1118_v40 = vmul.bf16 %v4093_v46, %v5149_v56  ;;  %v942_v47 = vmul.bf16 %v4094_v51, %v5149_v56  ;;  %v1125_v38 = vmul.bf16 %v4095_v18, %v4980_v15  ;;  %v4104_v30 = vld [vmem:[%s6128_s4] ss:$8 sps:$4 sm:$0xff]   ;;  %v4111_v31 = vld [vmem:[%s6128_s4 + $0x14] ss:$8 sps:$4 sm:$0xff]   ;;  %v4139_v20 = vld [vmem:[%s6127_s3 + $0x10] ss:$8 sps:$4 sm:$0xff]  }
 0x164   : > { %v949_v43 = vmul.bf16 %v4096_v60, %v4980_v15  ;;  %v1124_v32 = vmul.bf16 %v4099_v45, %v4974_v1  ;;  %v1116_v3 = vmul.bf16 %v4101_v39, %v4972_v0  ;;  %v940_v4 = vmul.bf16 %v4102_v41, %v4972_v0  ;;  %v4115_v11 = vld [vmem:[%s6132_s8 + $0x60] sm:$0xff]   ;;  %v4117_v23 = vld [vmem:[%s6132_s8 + $0x58] sm:$0xff]   ;;  %v4124_v46 = vld [vmem:[%s6132_s8 + $0x48] sm:$0xff]  }
 0x165   : > { %3655 = vmatpush3.bf16.msra.mxu1 %v1122_v63  ;;  %3767 = vmatpush3.bf16.msra.mxu0 %v946_v2  ;;  %v1117_v63 = vmul.bf16 %v4097_v49, %v4978_v14  ;;  %v941_v2 = vmul.bf16 %v4098_v36, %v4978_v14  ;;  %v1941_v33 = vmul.bf16 %v4107_v5, %v5036_v48  ;;  %v4114_v48 = vld [vmem:[%s6132_s8 + $0x28] sm:$0xff]   ;;  %v4151_v18 = vld [vmem:[%s6127_s3 + $0x30] ss:$8 sps:$4 sm:$0xff]   ;;  %v4152_v39 = vld [vmem:[%s6128_s4 + $0x74] ss:$8 sps:$4 sm:$0xff]  }
 0x166   : > { %3656 = vmatprep.subr.bf16.mxu1 %v1129_v35  ;;  %3768 = vmatprep.subr.bf16.mxu0 %v953_v37  ;;  %v948_v35 = vmul.bf16 %v4100_v61, %v4974_v1  ;;  %v4103_v37 = vld [vmem:[%s6132_s8 + $0x78] sm:$0xff]   ;;  %v1940_v9 = vmul.bf16 %v4109_v24, %v5050_v59  ;;  %v4118_v59 = vld [vmem:[%s6128_s4 + $0x24] ss:$8 sps:$4 sm:$0xff]   ;;  %v1939_v22 = vmul.bf16 %v4114_v48, %v5072_v62  ;;  %v4145_v21 = vld [vmem:[%s6127_s3 + $0x20] ss:$8 sps:$4 sm:$0xff]  }
 0x167   : > { %v1949_v28 = vmul.bf16 %v4103_v37, %v5038_v50  ;;  %v4137_v50 = vld [vmem:[%s6127_s3 + $0x14] ss:$8 sps:$4 sm:$0xff]   ;;  %v4136_v36 = vld [vmem:[%s6128_s4 + $0x40] ss:$8 sps:$4 sm:$0xff]   ;;  %v4146_v45 = vld [vmem:[%s6128_s4 + $0x64] ss:$8 sps:$4 sm:$0xff]  }
 0x168   : > { %v4121_v62 = vld [vmem:[%s6132_s8 + $0x18] sm:$0xff]   ;;  %v4167_v61 = vld [vmem:[%s6127_s3 + $0x64] ss:$8 sps:$4 sm:$0xff]   ;;  %v4181_v5 = vld [vmem:[%s6127_s3 + $0x80] ss:$8 sps:$4 sm:$0xff]  }
 0x169   : > { %3657 = vmatpush3.bf16.msra.mxu1 %v1121_v7  ;;  %3769 = vmatpush3.bf16.msra.mxu0 %v945_v8  ;;  %v4108_v7 = vld [vmem:[%s6132_s8 + $0x70] sm:$0xff]   ;;  %v4129_v8 = vld [vmem:[%s6127_s3] ss:$8 sps:$4 sm:$0xff]   ;;  %v1937_v55 = vmul.bf16 %v4121_v62, %v5128_v12  ;;  %v4158_v37 = vld [vmem:[%s6128_s4 + $0x84] ss:$8 sps:$4 sm:$0xff]  }
 0x16a   : > { %3658 = vmatprep.subr.bf16.mxu1 %v1128_v27  ;;  %3770 = vmatprep.subr.bf16.mxu0 %v952_v29  ;;  %v1948_v27 = vmul.bf16 %v4108_v7, %v5034_v16  ;;  %v4110_v29 = vld [vmem:[%s6132_s8 + $0x68] sm:$0xff]   ;;  %v4113_v16 = vld [vmem:[%s6128_s4 + $0x10] ss:$8 sps:$4 sm:$0xff]   ;;  %v4173_v41 = vld [vmem:[%s6127_s3 + $0x74] ss:$8 sps:$4 sm:$0xff]  }
 0x16b   : > { %v1947_v10 = vmul.bf16 %v4110_v29, %v5058_v42  ;;  %v4143_v42 = vld [vmem:[%s6127_s3 + $0x24] ss:$8 sps:$4 sm:$0xff]   ;;  %v4166_v7 = vld [vmem:[%s6128_s4 + $0x90] ss:$8 sps:$4 sm:$0xff]   ;;  %v4193_v24 = vld [vmem:[%s6127_s3 + $0xa0] ss:$8 sps:$4 sm:$0xff]  }
 0x16c   : > { %v4128_v12 = vld [vmem:[%s6132_s8 + $0x8] sm:$0xff]   ;;  %v4197_v29 = vld [vmem:[%s6127_s3 + $0xb4] ss:$8 sps:$4 sm:$0xff]   ;;  %v4199_v48 = vld [vmem:[%s6127_s3 + $0xb0] ss:$8 sps:$4 sm:$0xff]  }
 0x16d   : > { %3659 = vmatpush3.bf16.msra.mxu1 %v1120_v52  ;;  %3771 = vmatpush3.bf16.msra.mxu0 %v944_v54  ;;  %v4116_v52 = vld [vmem:[%s6132_s8 + $0x20] sm:$0xff]   ;;  %v1946_v54 = vmul.bf16 %v4115_v11, %v5084_v34  ;;  %v1935_v60 = vmul.bf16 %v4128_v12, %v4978_v14 }
 0x16e   : > { %3660 = vmatprep.subr.bf16.mxu1 %v1127_v17  ;;  %3772 = vmatprep.subr.bf16.mxu0 %v951_v19  ;;  %v1938_v25 = vmul.bf16 %v4116_v52, %v5100_v6  ;;  %v1945_v17 = vmul.bf16 %v4117_v23, %v5112_v26  ;;  %v4120_v34 = vld [vmem:[%s6128_s4 + $0x20] ss:$8 sps:$4 sm:$0xff]   ;;  %v4122_v19 = vld [vmem:[%s6132_s8 + $0x50] sm:$0xff]   ;;  %v4215_v23 = vld [vmem:[%s6127_s3 + $0xe4] ss:$8 sps:$4 sm:$0xff]  }
 0x16f   : > { %v4125_v6 = vld [vmem:[%s6128_s4 + $0x34] ss:$8 sps:$4 sm:$0xff]   ;;  %v4157_v14 = vld [vmem:[%s6127_s3 + $0x40] ss:$8 sps:$4 sm:$0xff]   ;;  %v4211_v52 = vld [vmem:[%s6127_s3 + $0xd0] ss:$8 sps:$4 sm:$0xff]  }
 0x170   : > { %v4149_v26 = vld [vmem:[%s6127_s3 + $0x34] ss:$8 sps:$4 sm:$0xff]   ;;  %v4184_v11 = vld [vmem:[%s6128_s4 + $0xc0] ss:$8 sps:$4 sm:$0xff]  }
 0x171   : > { %3661 = vmatpush3.bf16.msra.mxu1 %v1119_v57  ;;  %3773 = vmatpush3.bf16.msra.mxu0 %v943_v44  ;;  %v4123_v57 = vld [vmem:[%s6132_s8 + $0x10] sm:$0xff]   ;;  %v1944_v44 = vmul.bf16 %v4122_v19, %v5138_v13  ;;  %v4217_v62 = vld [vmem:[%s6127_s3 + $0xe0] ss:$8 sps:$4 sm:$0xff]  }
 0x172   : > { %3662 = vmatprep.subr.bf16.mxu1 %v1126_v53  ;;  %3774 = vmatprep.subr.bf16.mxu0 %v950_v58  ;;  %v1936_v51 = vmul.bf16 %v4123_v57, %v5149_v56  ;;  %v1943_v53 = vmul.bf16 %v4124_v46, %v4980_v15  ;;  %v4127_v13 = vld [vmem:[%s6128_s4 + $0x30] ss:$8 sps:$4 sm:$0xff]   ;;  %v4132_v58 = vld [vmem:[%s6132_s8 + $0x40] sm:$0xff]  }
 0x173   : > { %v4134_v56 = vld [vmem:[%s6128_s4 + $0x44] ss:$8 sps:$4 sm:$0xff]   ;;  %v4260_v19 = vld [vmem:[%s6126_s2 + $0x10] ss:$8 sps:$4 sm:$0xff]   ;;  %v4206_v57 = vld [vmem:[%s6129_s5] ss:$8 sps:$4 sm:$0xff]  }
 0x174   : > { %v4155_v15 = vld [vmem:[%s6127_s3 + $0x44] ss:$8 sps:$4 sm:$0xff]   ;;  %v4214_v46 = vld [vmem:[%s6129_s5 + $0x10] ss:$8 sps:$4 sm:$0xff]   ;;  %v4220_v12 = vld [vmem:[%s6129_s5 + $0x20] ss:$8 sps:$4 sm:$0xff]  }
 0x175   : > { %3663 = vmatpush3.bf16.msra.mxu1 %v1118_v40  ;;  %3775 = vmatpush3.bf16.msra.mxu0 %v942_v47  ;;  %v4133_v40 = vld [vmem:[%s6132_s8] sm:$0xff]   ;;  %v1942_v47 = vmul.bf16 %v4132_v58, %v4974_v1  ;;  %v4140_v1 = vld [vmem:[%s6128_s4 + $0x54] ss:$8 sps:$4 sm:$0xff]  }
 0x176   : > { %3664 = vmatprep.subr.bf16.mxu1 %v1125_v38  ;;  %3776 = vmatprep.subr.bf16.mxu0 %v949_v43  ;;  %v1934_v49 = vmul.bf16 %v4133_v40, %v4972_v0  ;;  %v4161_v38 = vld [vmem:[%s6127_s3 + $0x54] ss:$8 sps:$4 sm:$0xff]   ;;  %v4142_v0 = vld [vmem:[%s6128_s4 + $0x50] ss:$8 sps:$4 sm:$0xff]   ;;  %v4229_v58 = vld [vmem:[%s6129_s5 + $0x44] ss:$8 sps:$4 sm:$0xff]  }
 0x177   : > { %v4163_v43 = vld [vmem:[%s6127_s3 + $0x50] ss:$8 sps:$4 sm:$0xff]   ;;  %v4233_v40 = vld [vmem:[%s6129_s5 + $0x60] ss:$8 sps:$4 sm:$0xff]  }
 0x179   : > { %3665 = vmatpush3.bf16.msra.mxu1 %v1117_v63  ;;  %3777 = vmatpush3.bf16.msra.mxu0 %v941_v2  ;;  %v4148_v63 = vld [vmem:[%s6128_s4 + $0x60] ss:$8 sps:$4 sm:$0xff]  }
 0x17a   : > { %3666 = vmatprep.subr.bf16.mxu1 %v1124_v32  ;;  %3778 = vmatprep.subr.bf16.mxu0 %v948_v35  ;;  %v4169_v2 = vld [vmem:[%s6127_s3 + $0x60] ss:$8 sps:$4 sm:$0xff]   ;;  %v4154_v32 = vld [vmem:[%s6128_s4 + $0x70] ss:$8 sps:$4 sm:$0xff]  }
 0x17b   : > { %v4175_v35 = vld [vmem:[%s6127_s3 + $0x70] ss:$8 sps:$4 sm:$0xff]  }
 0x17d   : > { %3667 = vmatpush3.bf16.msra.mxu1 %v1116_v3  ;;  %3779 = vmatpush3.bf16.msra.mxu0 %v940_v4  ;;  %v4179_v3 = vld [vmem:[%s6127_s3 + $0x84] ss:$8 sps:$4 sm:$0xff]   ;;  %v4160_v4 = vld [vmem:[%s6128_s4 + $0x80] ss:$8 sps:$4 sm:$0xff]  }
 0x17e   : > { %3876 = vmatprep.subr.bf16.mxu1 %v1949_v28  ;;  %v4164_v28 = vld [vmem:[%s6128_s4 + $0x94] ss:$8 sps:$4 sm:$0xff]  }
 0x180   : > { %1325 = vmatmul.mubr.bf16.vlgmr.msra.gmra.mxu1 %v4104_v30  ;;  %1646 = vmatmul.mubr.bf16.vlgmr.msra.gmra.mxu0 %v4129_v8  ;;  %v4185_v30 = vld [vmem:[%s6127_s3 + $0x94] ss:$8 sps:$4 sm:$0xff]   ;;  %v4187_v8 = vld [vmem:[%s6127_s3 + $0x90] ss:$8 sps:$4 sm:$0xff]  }
 0x181   : > { %3877 = vmatpush3.bf16.msra.mxu1 %v1941_v33  ;;  %1332 = vmatprep.mubr.bf16.mxu1 %v4111_v31  ;;  %v4170_v31 = vld [vmem:[%s6128_s4 + $0xa4] ss:$8 sps:$4 sm:$0xff]   ;;  %v4172_v33 = vld [vmem:[%s6128_s4 + $0xa0] ss:$8 sps:$4 sm:$0xff]  }
 0x182   : > { %3878 = vmatprep.subr.bf16.mxu1 %v1948_v27  ;;  %1653 = vmatprep.mubr.bf16.mxu0 %v4137_v50  ;;  %v4191_v50 = vld [vmem:[%s6127_s3 + $0xa4] ss:$8 sps:$4 sm:$0xff]   ;;  %v4176_v27 = vld [vmem:[%s6128_s4 + $0xb4] ss:$8 sps:$4 sm:$0xff]  }
 0x185   : > { %3879 = vmatpush3.bf16.msra.mxu1 %v1940_v9  ;;  %v4178_v9 = vld [vmem:[%s6128_s4 + $0xb0] ss:$8 sps:$4 sm:$0xff]  }
 0x186   : > { %3880 = vmatprep.subr.bf16.mxu1 %v1947_v10  ;;  %v4182_v10 = vld [vmem:[%s6128_s4 + $0xc4] ss:$8 sps:$4 sm:$0xff]  }
 0x188   : > { %1333 = vmatmul.mubr.bf16.gmra.mxu1 %v4113_v16  ;;  %1654 = vmatmul.mubr.bf16.gmra.mxu0 %v4139_v20  ;;  %v4203_v16 = vld [vmem:[%s6127_s3 + $0xc4] ss:$8 sps:$4 sm:$0xff]   ;;  %v4205_v20 = vld [vmem:[%s6127_s3 + $0xc0] ss:$8 sps:$4 sm:$0xff]  }
 0x189   : > { %3881 = vmatpush3.bf16.msra.mxu1 %v1939_v22  ;;  %1340 = vmatprep.mubr.bf16.mxu1 %v4118_v59  ;;  %v4188_v59 = vld [vmem:[%s6128_s4 + $0xd4] ss:$8 sps:$4 sm:$0xff]   ;;  %v4190_v22 = vld [vmem:[%s6128_s4 + $0xd0] ss:$8 sps:$4 sm:$0xff]  }
 0x18a   : > { %3882 = vmatprep.subr.bf16.mxu1 %v1946_v54  ;;  %1661 = vmatprep.mubr.bf16.mxu0 %v4143_v42  ;;  %v4209_v42 = vld [vmem:[%s6127_s3 + $0xd4] ss:$8 sps:$4 sm:$0xff]   ;;  %v4194_v54 = vld [vmem:[%s6128_s4 + $0xe4] ss:$8 sps:$4 sm:$0xff]  }
 0x18d   : > { %3883 = vmatpush3.bf16.msra.mxu1 %v1938_v25  ;;  %v4196_v25 = vld [vmem:[%s6128_s4 + $0xe0] ss:$8 sps:$4 sm:$0xff]  }
 0x18e   : > { %3884 = vmatprep.subr.bf16.mxu1 %v1945_v17  ;;  %v4200_v17 = vld [vmem:[%s6128_s4 + $0xf4] ss:$8 sps:$4 sm:$0xff]  }
 0x190   : > { %1341 = vmatmul.mubr.bf16.gmra.mxu1 %v4120_v34  ;;  %1662 = vmatmul.mubr.bf16.gmra.mxu0 %v4145_v21  ;;  %v4221_v34 = vld [vmem:[%s6127_s3 + $0xf4] ss:$8 sps:$4 sm:$0xff]  }
 0x191   : > { %3885 = vmatpush3.bf16.msra.mxu1 %v1937_v55  ;;  %1348 = vmatprep.mubr.bf16.mxu1 %v4125_v6  ;;  %v4262_v21 = vld [vmem:[%s6126_s2 + $0x14] ss:$8 sps:$4 sm:$0xff]   ;;  %v4202_v6 = vld [vmem:[%s6128_s4 + $0xf0] ss:$8 sps:$4 sm:$0xff]   ;;  %v4208_v55 = vld [vmem:[%s6129_s5 + $0x4] ss:$8 sps:$4 sm:$0xff]  }
 0x192   : > { %3886 = vmatprep.subr.bf16.mxu1 %v1944_v44  ;;  %1669 = vmatprep.mubr.bf16.mxu0 %v4149_v26  ;;  %v4223_v26 = vld [vmem:[%s6127_s3 + $0xf0] ss:$8 sps:$4 sm:$0xff]   ;;  %v4212_v44 = vld [vmem:[%s6129_s5 + $0x14] ss:$8 sps:$4 sm:$0xff]  }
 0x193   : > { %2500 = vmatprep.subr.bf16.mxu0 %v4262_v21 }
 0x194   : > { %2501 = vmatpush1.bf16.msra.mxu0 %v4260_v19  ;;  %v4256_v19 = vld [vmem:[%s6129_s5 + $0xd4] ss:$8 sps:$4 sm:$0xff]  }
 0x195   : > { %3887 = vmatpush3.bf16.msra.mxu1 %v1936_v51  ;;  %v4218_v51 = vld [vmem:[%s6129_s5 + $0x24] ss:$8 sps:$4 sm:$0xff]  }
 0x196   : > { %3888 = vmatprep.subr.bf16.mxu1 %v1943_v53  ;;  %v4224_v53 = vld [vmem:[%s6129_s5 + $0x34] ss:$8 sps:$4 sm:$0xff]  }
 0x198   : > { %1349 = vmatmul.mubr.bf16.gmra.mxu1 %v4127_v13  ;;  %1670 = vmatmul.mubr.bf16.gmra.mxu0 %v4151_v18  ;;  %v4226_v13 = vld [vmem:[%s6129_s5 + $0x30] ss:$8 sps:$4 sm:$0xff]   ;;  %v4227_v18 = vld [vmem:[%s6129_s5 + $0x40] ss:$8 sps:$4 sm:$0xff]  }
 0x199   : > { %3889 = vmatpush3.bf16.msra.mxu1 %v1935_v60  ;;  %1356 = vmatprep.mubr.bf16.mxu1 %v4134_v56  ;;  %v4232_v56 = vld [vmem:[%s6129_s5 + $0x54] ss:$8 sps:$4 sm:$0xff]   ;;  %v4235_v60 = vld [vmem:[%s6129_s5 + $0x64] ss:$8 sps:$4 sm:$0xff]  }
 0x19a   : > { %3890 = vmatprep.subr.bf16.mxu1 %v1942_v47  ;;  %1677 = vmatprep.mubr.bf16.mxu0 %v4155_v15  ;;  %v4230_v15 = vld [vmem:[%s6129_s5 + $0x50] ss:$8 sps:$4 sm:$0xff]   ;;  %v4238_v47 = vld [vmem:[%s6129_s5 + $0x74] ss:$8 sps:$4 sm:$0xff]  }
 0x19d   : > { %3891 = vmatpush3.bf16.msra.mxu1 %v1934_v49  ;;  %v4266_v49 = vld [vmem:[%s6126_s2] ss:$8 sps:$4 sm:$0xff]  }
 0x1a0   : > { %1357 = vmatmul.mubr.bf16.gmra.mxu1 %v4136_v36  ;;  %1678 = vmatmul.mubr.bf16.gmra.mxu0 %v4157_v14  ;;  %v4268_v36 = vld [vmem:[%s6126_s2 + $0x4] ss:$8 sps:$4 sm:$0xff]   ;;  %v4236_v14 = vld [vmem:[%s6129_s5 + $0x70] ss:$8 sps:$4 sm:$0xff]  }
 0x1a1   : > { %1364 = vmatprep.mubr.bf16.mxu1 %v4140_v1  ;;  %1685 = vmatprep.mubr.bf16.mxu0 %v4161_v38  ;;  %v4241_v1 = vld [vmem:[%s6129_s5 + $0x84] ss:$8 sps:$4 sm:$0xff]   ;;  %v4239_v38 = vld [vmem:[%s6129_s5 + $0x80] ss:$8 sps:$4 sm:$0xff]  }
 0x1a2   : > { %2502 = vmatprep.subr.bf16.mxu0 %v4268_v36  ;;  %v4265_v36 = vld [vmem:[%s6129_s5 + $0xf4] ss:$8 sps:$4 sm:$0xff]  }
 0x1a3   : > { %2503 = vmatpush1.bf16.msra.mxu0 %v4266_v49 }
 0x1a8   : > { %1365 = vmatmul.mubr.bf16.gmra.mxu1 %v4142_v0  ;;  %1686 = vmatmul.mubr.bf16.gmra.mxu0 %v4163_v43  ;;  %v4244_v0 = vld [vmem:[%s6129_s5 + $0x94] ss:$8 sps:$4 sm:$0xff]  }
 0x1a9   : > { %1372 = vmatprep.mubr.bf16.mxu1 %v4146_v45  ;;  %1693 = vmatprep.mubr.bf16.mxu0 %v4167_v61 }
 0x1b0   : > { %1373 = vmatmul.mubr.bf16.gmra.mxu1 %v4148_v63  ;;  %1694 = vmatmul.mubr.bf16.gmra.mxu0 %v4169_v2 }
 0x1b1   : > { %1380 = vmatprep.mubr.bf16.mxu1 %v4152_v39  ;;  %1701 = vmatprep.mubr.bf16.mxu0 %v4173_v41  ;;  %v4242_v41 = vld [vmem:[%s6129_s5 + $0x90] ss:$8 sps:$4 sm:$0xff]  }
 0x1b8   : > { %1381 = vmatmul.mubr.bf16.gmra.mxu1 %v4154_v32  ;;  %1702 = vmatmul.mubr.bf16.gmra.mxu0 %v4175_v35  ;;  %v4247_v35 = vld [vmem:[%s6129_s5 + $0xa4] ss:$8 sps:$4 sm:$0xff]  }
 0x1b9   : > { %1388 = vmatprep.mubr.bf16.mxu1 %v4158_v37  ;;  %1709 = vmatprep.mubr.bf16.mxu0 %v4179_v3 }
 0x1c0   : > { %1389 = vmatmul.mubr.bf16.gmra.mxu1 %v4160_v4  ;;  %1710 = vmatmul.mubr.bf16.gmra.mxu0 %v4181_v5 }
 0x1c1   : > { %1396 = vmatprep.mubr.bf16.mxu1 %v4164_v28  ;;  %1717 = vmatprep.mubr.bf16.mxu0 %v4185_v30 }
 0x1c8   : > { %1397 = vmatmul.mubr.bf16.gmra.mxu1 %v4166_v7  ;;  %1718 = vmatmul.mubr.bf16.gmra.mxu0 %v4187_v8  ;;  %v4245_v8 = vld [vmem:[%s6129_s5 + $0xa0] ss:$8 sps:$4 sm:$0xff]  }
 0x1c9   : > { %1404 = vmatprep.mubr.bf16.mxu1 %v4170_v31  ;;  %1725 = vmatprep.mubr.bf16.mxu0 %v4191_v50  ;;  %v4250_v50 = vld [vmem:[%s6129_s5 + $0xb4] ss:$8 sps:$4 sm:$0xff]  }
 0x1d0   : > { %1405 = vmatmul.mubr.bf16.gmra.mxu1 %v4172_v33  ;;  %1726 = vmatmul.mubr.bf16.gmra.mxu0 %v4193_v24 }
 0x1d1   : > { %1412 = vmatprep.mubr.bf16.mxu1 %v4176_v27  ;;  %1733 = vmatprep.mubr.bf16.mxu0 %v4197_v29 }
 0x1d8   : > { %1413 = vmatmul.mubr.bf16.gmra.mxu1 %v4178_v9  ;;  %1734 = vmatmul.mubr.bf16.gmra.mxu0 %v4199_v48  ;;  %v6140_v9 = vmov 0  }
 0x1d9   : > { %1420 = vmatprep.mubr.bf16.mxu1 %v4182_v10  ;;  %1741 = vmatprep.mubr.bf16.mxu0 %v4203_v16 }
 0x1e0   : > { %1421 = vmatmul.mubr.bf16.gmra.mxu1 %v4184_v11  ;;  %1742 = vmatmul.mubr.bf16.gmra.mxu0 %v4205_v20  ;;  %v4248_v11 = vld [vmem:[%s6129_s5 + $0xb0] ss:$8 sps:$4 sm:$0xff]  }
 0x1e1   : > { %1428 = vmatprep.mubr.bf16.mxu1 %v4188_v59  ;;  %1749 = vmatprep.mubr.bf16.mxu0 %v4209_v42  ;;  %v4253_v59 = vld [vmem:[%s6129_s5 + $0xc4] ss:$8 sps:$4 sm:$0xff]  }
 0x1e8   : > { %1429 = vmatmul.mubr.bf16.gmra.mxu1 %v4190_v22  ;;  %1750 = vmatmul.mubr.bf16.gmra.mxu0 %v4211_v52 }
 0x1e9   : > { %1436 = vmatprep.mubr.bf16.mxu1 %v4194_v54  ;;  %1757 = vmatprep.mubr.bf16.mxu0 %v4215_v23 }
 0x1f0   : > { %1437 = vmatmul.mubr.bf16.gmra.mxu1 %v4196_v25  ;;  %1758 = vmatmul.mubr.bf16.gmra.mxu0 %v4217_v62 }
 0x1f1   : > { %1444 = vmatprep.mubr.bf16.mxu1 %v4200_v17  ;;  %1765 = vmatprep.mubr.bf16.mxu0 %v4221_v34  ;;  %v4251_v17 = vld [vmem:[%s6129_s5 + $0xc0] ss:$8 sps:$4 sm:$0xff]  }
 0x1f8   : > { %1445 = vmatmul.mubr.bf16.gmra.mxu1 %v4202_v6  ;;  %1766 = vmatmul.mubr.bf16.gmra.mxu0 %v4223_v26 }
 0x1f9   : > { %2142 = vmatprep.mubr.bf16.mxu1 %v4208_v55  ;;  %2520 = vmatprep.mubr.bf16.mxu0 %v6140_v9 }
 0x200   : > { %2143 = vmatmul.mubr.bf16.vlgmr.msra.gmra.mxu1 %v4206_v57 }
 0x201   : > { %2150 = vmatprep.mubr.bf16.mxu1 %v4212_v44 }
 0x208   : > { %2151 = vmatmul.mubr.bf16.gmra.mxu1 %v4214_v46 }
 0x209   : > { %2158 = vmatprep.mubr.bf16.mxu1 %v4218_v51  ;;  %v4254_v51 = vld [vmem:[%s6129_s5 + $0xd0] ss:$8 sps:$4 sm:$0xff]  }
 0x210   : > { %2159 = vmatmul.mubr.bf16.gmra.mxu1 %v4220_v12 }
 0x211   : > { %2166 = vmatprep.mubr.bf16.mxu1 %v4224_v53  ;;  %v4259_v53 = vld [vmem:[%s6129_s5 + $0xe4] ss:$8 sps:$4 sm:$0xff]  }
 0x218   : > { %2167 = vmatmul.mubr.bf16.gmra.mxu1 %v4226_v13 }
 0x219   : > { %2174 = vmatprep.mubr.bf16.mxu1 %v4229_v58 }
 0x220   : > { %2175 = vmatmul.mubr.bf16.gmra.mxu1 %v4227_v18 }
 0x221   : > { %2182 = vmatprep.mubr.bf16.mxu1 %v4232_v56 }
 0x228   : > { %2183 = vmatmul.mubr.bf16.gmra.mxu1 %v4230_v15 }
 0x229   : > { %2190 = vmatprep.mubr.bf16.mxu1 %v4235_v60 }
 0x230   : > { %2191 = vmatmul.mubr.bf16.gmra.mxu1 %v4233_v40 }
 0x231   : > { %2198 = vmatprep.mubr.bf16.mxu1 %v4238_v47  ;;  %v4257_v47 = vld [vmem:[%s6129_s5 + $0xe0] ss:$8 sps:$4 sm:$0xff]  }
 0x238   : > { %2199 = vmatmul.mubr.bf16.gmra.mxu1 %v4236_v14 }
 0x239   : > { %2206 = vmatprep.mubr.bf16.mxu1 %v4241_v1 }
 0x240   : > { %v3668_v43 = vpop.f32.mrf.mxu1  ;;  %2207 = vmatmul.mubr.bf16.gmra.mxu1 %v4239_v38  ;;  %v5514_v45 = vpop.f32.mrf.mxu0 }
 0x241   : > { %2214 = vmatprep.mubr.bf16.mxu1 %v4244_v0 }
 0x242   : > { %v3669_v61 = vpop.f32.mrf.mxu1  ;;  %v5516_v63 = vpop.f32.mrf.mxu0 }
 0x243   : > { %v5518_v2 = vadd.f32 %v3669_v61, %v3668_v43 }
 0x244   : > { %v3671_v39 = vpop.f32.mrf.mxu1  ;;  %v5523_v32 = vpop.f32.mrf.mxu0 }
 0x246   : > { %v3672_v37 = vpop.f32.mrf.mxu1  ;;  %v5530_v5 = vpop.f32.mrf.mxu0 }
 0x247   : > { %v5528_v3 = vadd.f32 %v3672_v37, %v3671_v39 }
 0x248   : > { %v3674_v4 = vpop.f32.mrf.mxu1  ;;  %2215 = vmatmul.mubr.bf16.gmra.mxu1 %v4242_v41  ;;  %v5537_v31 = vpop.f32.mrf.mxu0 }
 0x249   : > { %2222 = vmatprep.mubr.bf16.mxu1 %v4247_v35  ;;  %v4263_v35 = vld [vmem:[%s6129_s5 + $0xf0] ss:$8 sps:$4 sm:$0xff]  }
 0x24a   : > { %v3675_v28 = vpop.f32.mrf.mxu1  ;;  %v5544_v29 = vpop.f32.mrf.mxu0 }
 0x24b   : > { %v5532_v30 = vadd.f32 %v3675_v28, %v3674_v4 }
 0x24c   : > { %v3677_v7 = vpop.f32.mrf.mxu1  ;;  %v5552_v20 = vpop.f32.mrf.mxu0 }
 0x24e   : > { %v3678_v33 = vpop.f32.mrf.mxu1  ;;  %v5559_v54 = vpop.f32.mrf.mxu0 }
 0x24f   : > { %v5542_v24 = vadd.f32 %v3678_v33, %v3677_v7 }
 0x250   : > { %v3680_v27 = vpop.f32.mrf.mxu1  ;;  %2223 = vmatmul.mubr.bf16.gmra.mxu1 %v4245_v8  ;;  %v5566_v34 = vpop.f32.mrf.mxu0 }
 0x251   : > { %2230 = vmatprep.mubr.bf16.mxu1 %v4250_v50 }
 0x252   : > { %v3681_v48 = vpop.f32.mrf.mxu1  ;;  %v5573_v55 = vpop.f32.mrf.mxu0 }
 0x253   : > { %v5547_v10 = vadd.f32 %v3681_v48, %v3680_v27 }
 0x254   : > { %v3683_v16 = vpop.f32.mrf.mxu1  ;;  %v5580_v12 = vpop.f32.mrf.mxu0 }
 0x256   : > { %v3684_v42 = vpop.f32.mrf.mxu1  ;;  %v5587_v56 = vpop.f32.mrf.mxu0 }
 0x257   : > { %v5557_v22 = vadd.f32 %v3684_v42, %v3683_v16 }
 0x258   : > { %v3686_v52 = vpop.f32.mrf.mxu1  ;;  %2231 = vmatmul.mubr.bf16.gmra.mxu1 %v4248_v11  ;;  %v5594_v49 = vpop.f32.mrf.mxu0 }
 0x259   : > { %2238 = vmatprep.mubr.bf16.mxu1 %v4253_v59 }
 0x25a   : > { %v3687_v23 = vpop.f32.mrf.mxu1  ;;  %v5601_v0 = vpop.f32.mrf.mxu0 }
 0x25b   : > { %v5561_v25 = vadd.f32 %v3687_v23, %v3686_v52 }
 0x25c   : > { %v3689_v62 = vpop.f32.mrf.mxu1  ;;  %v5605_v41 = vpop.f32.mrf.mxu0 }
 0x25e   : > { %v3690_v21 = vpop.f32.mrf.mxu1  ;;  %v5612_v7 = vpop.f32.mrf.mxu0 }
 0x25f   : > { %v5571_v6 = vadd.f32 %v3690_v21, %v3689_v62 }
 0x260   : > { %v3692_v26 = vpop.f32.mrf.mxu1  ;;  %2239 = vmatmul.mubr.bf16.gmra.mxu1 %v4251_v17  ;;  %v5616_v33 = vpop.f32.mrf.mxu0 }
 0x261   : > { %2246 = vmatprep.mubr.bf16.mxu1 %v4256_v19 }
 0x262   : > { %v3693_v57 = vpop.f32.mrf.mxu1  ;;  %v5620_v11 = vpop.f32.mrf.mxu0 }
 0x263   : > { %v5575_v44 = vadd.f32 %v3693_v57, %v3692_v26 }
 0x264   : > { %v3695_v46 = vpop.f32.mrf.mxu1  ;;  %v5624_v23 = vpop.f32.mrf.mxu0 }
 0x266   : > { %v3696_v13 = vpop.f32.mrf.mxu1  ;;  %v5628_v21 = vpop.f32.mrf.mxu0 }
 0x267   : > { %v5585_v58 = vadd.f32 %v3696_v13, %v3695_v46 }
 0x268   : > { %v3698_v18 = vpop.f32.mrf.mxu1  ;;  %2247 = vmatmul.mubr.bf16.gmra.mxu1 %v4254_v51  ;;  %v5632_v51 = vpop.f32.mrf.mxu0 }
 0x269   : > { %2254 = vmatprep.mubr.bf16.mxu1 %v4259_v53 }
 0x26a   : > { %v3699_v15 = vpop.f32.mrf.mxu1 }
 0x26b   : > { %v5589_v60 = vadd.f32 %v3699_v15, %v3698_v18  ;;  %v5636_v15 = vpop.f32.mrf.mxu0 }
 0x26c   : > { %v3701_v40 = vpop.f32.mrf.mxu1 }
 0x26e   : > { %v3702_v14 = vpop.f32.mrf.mxu1 }
 0x26f   : > { %v5599_v1 = vadd.f32 %v3702_v14, %v3701_v40  ;;  %v5640_v14 = vpop.f32.mrf.mxu0 }
 0x270   : > { %v3704_v38 = vpop.f32.mrf.mxu1  ;;  %2255 = vmatmul.mubr.bf16.gmra.mxu1 %v4257_v47 }
 0x271   : > { %2262 = vmatprep.mubr.bf16.mxu1 %v4265_v36 }
 0x272   : > { %v3705_v43 = vpop.f32.mrf.mxu1 }
 0x273   : > { %v5603_v61 = vadd.f32 %v3705_v43, %v3704_v38 }
 0x274   : > { %v3707_v39 = vpop.f32.mrf.mxu1 }
 0x276   : > { %v3708_v37 = vpop.f32.mrf.mxu1 }
 0x277   : > { %v5610_v4 = vadd.f32 %v3708_v37, %v3707_v39 }
 0x278   : > { %v3710_v28 = vpop.f32.mrf.mxu1  ;;  %2263 = vmatmul.mubr.bf16.gmra.mxu1 %v4263_v35  ;;  %v5644_v35 = vpop.f32.mrf.mxu0 }
 0x27a   : > { %v3711_v8 = vpop.f32.mrf.mxu1 }
 0x27b   : > { %v5614_v50 = vadd.f32 %v3711_v8, %v3710_v28 }
 0x27c   : > { %v3713_v27 = vpop.f32.mrf.mxu1 }
 0x27e   : > { %v3714_v48 = vpop.f32.mrf.mxu1 }
 0x27f   : > { %v5618_v16 = vadd.f32 %v3714_v48, %v3713_v27  ;;  %v5648_v27 = vpop.f32.mrf.mxu0 }
 0x280   : > { %v3716_v59 = vpop.f32.mrf.mxu1 }
 0x282   : > { %v3717_v42 = vpop.f32.mrf.mxu1 }
 0x283   : > { %v5622_v52 = vadd.f32 %v3717_v42, %v3716_v59 }
 0x284   : > { %v3719_v62 = vpop.f32.mrf.mxu1 }
 0x286   : > { %v3720_v17 = vpop.f32.mrf.mxu1 }
 0x287   : > { %v5626_v19 = vadd.f32 %v3720_v17, %v3719_v62  ;;  %v5652_v62 = vpop.f32.mrf.mxu0 }
 0x288   : > { %v3722_v26 = vpop.f32.mrf.mxu1 }
 0x289   : > { %6151 = vst [vmem:[#allocation11_spill] sm:$0xff] %v5626_v19 }
 0x28a   : > { %v3723_v57 = vpop.f32.mrf.mxu1 }
 0x28b   : > { %v5630_v46 = vadd.f32 %v3723_v57, %v3722_v26 }
 0x28c   : > { %v3725_v53 = vpop.f32.mrf.mxu1 }
 0x28d   : > { %6152 = vst [vmem:[#allocation12_spill] sm:$0xff] %v5630_v46 }
 0x28e   : > { %v3726_v13 = vpop.f32.mrf.mxu1 }
 0x28f   : > { %v5634_v18 = vadd.f32 %v3726_v13, %v3725_v53  ;;  %v5656_v53 = vpop.f32.mrf.mxu0 }
 0x290   : > { %v3728_v40 = vpop.f32.mrf.mxu1 }
 0x291   : > { %6153 = vst [vmem:[#allocation13_spill] sm:$0xff] %v5634_v18 }
 0x292   : > { %v3729_v47 = vpop.f32.mrf.mxu1 }
 0x293   : > { %v5638_v36 = vadd.f32 %v3729_v47, %v3728_v40 }
 0x294   : > { %v3731_v38 = vpop.f32.mrf.mxu1 }
 0x295   : > { %6154 = vst [vmem:[#allocation14_spill] sm:$0xff] %v5638_v36 }
 0x296   : > { %v3732_v43 = vpop.f32.mrf.mxu1 }
 0x297   : > { %v5642_v39 = vadd.f32 %v3732_v43, %v3731_v38  ;;  %v5660_v38 = vpop.f32.mrf.mxu0 }
 0x298   : > { %v3734_v37 = vpop.f32.mrf.mxu1 }
 0x299   : > { %6155 = vst [vmem:[#allocation15_spill] sm:$0xff] %v5642_v39 }
 0x29a   : > { %v3735_v28 = vpop.f32.mrf.mxu1 }
 0x29b   : > { %v5646_v8 = vadd.f32 %v3735_v28, %v3734_v37 }
 0x29c   : > { %v3737_v48 = vpop.f32.mrf.mxu1 }
 0x29d   : > { %6156 = vst [vmem:[#allocation16_spill] sm:$0xff] %v5646_v8 }
 0x29e   : > { %v3738_v59 = vpop.f32.mrf.mxu1 }
 0x29f   : > { %v5650_v42 = vadd.f32 %v3738_v59, %v3737_v48  ;;  %v5664_v48 = vpop.f32.mrf.mxu0 }
 0x2a0   : > { %v3740_v17 = vpop.f32.mrf.mxu1 }
 0x2a1   : > { %6157 = vst [vmem:[#allocation17_spill] sm:$0xff] %v5650_v42 }
 0x2a2   : > { %v3741_v26 = vpop.f32.mrf.mxu1 }
 0x2a3   : > { %v5654_v57 = vadd.f32 %v3741_v26, %v3740_v17  ;;  %v5668_v17 = vpop.f32.mrf.mxu0 }
 0x2a4   : > { %v3743_v13 = vpop.f32.mrf.mxu1 }
 0x2a5   : > { %6158 = vst [vmem:[#allocation18_spill] sm:$0xff] %v5654_v57 }
 0x2a6   : > { %v3744_v40 = vpop.f32.mrf.mxu1 }
 0x2a7   : > { %v5658_v47 = vadd.f32 %v3744_v40, %v3743_v13  ;;  %v5672_v13 = vpop.f32.mrf.mxu0 }
 0x2a8   : > { %v3746_v43 = vpop.f32.mrf.mxu1 }
 0x2a9   : > { %6159 = vst [vmem:[#allocation19_spill] sm:$0xff] %v5658_v47 }
 0x2aa   : > { %v3747_v37 = vpop.f32.mrf.mxu1 }
 0x2ab   : > { %v5662_v28 = vadd.f32 %v3747_v37, %v3746_v43  ;;  %v5676_v43 = vpop.f32.mrf.mxu0 }
 0x2ac   : > { %v3749_v59 = vpop.f32.mrf.mxu1 }
 0x2ad   : > { %6160 = vst [vmem:[#allocation20_spill] sm:$0xff] %v5662_v28 }
 0x2ae   : > { %v3750_v9 = vpop.f32.mrf.mxu1 }
 0x2af   : > { %v5666_v42 = vadd.f32 %v3750_v9, %v3749_v59  ;;  %v5680_v9 = vpop.f32.mrf.mxu0 }
 0x2b0   : > { %v3752_v26 = vpop.f32.mrf.mxu1 }
 0x2b1   : > { %6161 = vst [vmem:[#allocation21_spill] sm:$0xff] %v5666_v42 }
 0x2b2   : > { %v3753_v57 = vpop.f32.mrf.mxu1 }
 0x2b3   : > { %v5670_v8 = vadd.f32 %v3753_v57, %v3752_v26  ;;  %v3782_v57 = vadd.f32 %v5516_v63, %v5514_v45  ;;  %v2303_v45 = vld [vmem:[%s6133_s9] sm:$0xff] }
 0x2b4   : > { %v3755_v40 = vpop.f32.mrf.mxu1 }
 0x2b5   : > { %6162 = vst [vmem:[#allocation22_spill] sm:$0xff] %v5670_v8  ;;  %v5686_v8 = vpop.f32.mrf.mxu0 }
 0x2b6   : > { %v3756_v47 = vpop.f32.mrf.mxu1 }
 0x2b7   : > { %v5674_v39 = vadd.f32 %v3756_v47, %v3755_v40  ;;  %v1648_v40 = vadd.f32 %v3782_v57, %v5518_v2 }
 0x2b8   : > { %v3758_v37 = vpop.f32.mrf.mxu1 }
 0x2b9   : > { %6163 = vst [vmem:[#allocation23_spill] sm:$0xff] %v5674_v39  ;;  %v3785_v39 = vadd.f32 %v5530_v5, %v5523_v32  ;;  %v2304_v32 = vld [vmem:[%s6133_s9 + $0x8] sm:$0xff] }
 0x2ba   : > { %v3759_v28 = vpop.f32.mrf.mxu1 }
 0x2bb   : > { %v5678_v36 = vadd.f32 %v3759_v28, %v3758_v37  ;;  %v5691_v37 = vpop.f32.mrf.mxu0 }
 0x2bc   : > { %v3761_v59 = vpop.f32.mrf.mxu1 }
 0x2bd   : > { %6164 = vst [vmem:[#allocation24_spill] sm:$0xff] %v5678_v36  ;;  %v5699_v2 = vpop.f32.mrf.mxu0 }
 0x2be   : > { %v3762_v42 = vpop.f32.mrf.mxu1  ;;  %6166 = vst [vmem:[#allocation26_spill] sm:$0xff] %v5699_v2  ;;  %v2305_v2 = vld [vmem:[%s6133_s9 + $0x10] sm:$0xff] }
 0x2bf   : > { %v5684_v26 = vadd.f32 %v3762_v42, %v3761_v59  ;;  %v1651_v42 = vadd.f32 %v3785_v39, %v5528_v3  ;;  %v3788_v59 = vadd.f32 %v5544_v29, %v5537_v31  ;;  %v5707_v19 = vpop.f32.mrf.mxu0 }
 0x2c0   : > { %v3892_v18 = vpop.f32.mrf.mxu1 }
 0x2c1   : > { %6165 = vst [vmem:[#allocation25_spill] sm:$0xff] %v5684_v26 }
 0x2c2   : > { %v3893_v47 = vpop.f32.mrf.mxu1 }
 0x2c3   : > { %v3894_v28 = vadd.f32 %v3893_v47, %v3892_v18 }
 0x2c4   : > { %v3895_v36 = vpop.f32.mrf.mxu1 }
 0x2c5   : > { %v2271_v46 = vadd.f32 %v3894_v28, %v1648_v40  ;;  %v1656_v40 = vadd.f32 %v3788_v59, %v5532_v30  ;;  %v3791_v28 = vadd.f32 %v5559_v54, %v5552_v20  ;;  %v3794_v30 = vadd.f32 %v5573_v55, %v5566_v34 }
 0x2c6   : > { %v3896_v63 = vpop.f32.mrf.mxu1  ;;  %v3797_v34 = vadd.f32 %v5587_v56, %v5580_v12 }
 0x2c7   : > { %v3897_v26 = vadd.f32 %v3896_v63, %v3895_v36  ;;  %v2335_v18 = vadd.f32 %v2303_v45, %v2271_v46  ;;  %v5715_v45 = vpop.f32.mrf.mxu0 }
 0x2c8   : > { %v3898_v5 = vpop.f32.mrf.mxu1 }
 0x2c9   : > { %v2272_v57 = vadd.f32 %v3897_v26, %v1651_v42  ;;  %v2367_v29 = vmax.f32 %v2335_v18, 0.0  ;;  %v1659_v26 = vadd.f32 %v3791_v28, %v5542_v24  ;;  %v2306_v42 = vld [vmem:[%s6133_s9 + $0x18] sm:$0xff]  ;;  %v1664_v24 = vadd.f32 %v3794_v30, %v5547_v10 }
 0x2ca   : > { %v3899_v47 = vpop.f32.mrf.mxu1  ;;  %v3800_v10 = vadd.f32 %v5601_v0, %v5594_v49  ;;  %v3803_v49 = vadd.f32 %v5612_v7, %v5605_v41 }
 0x2cb   : > { %v2336_v3 = vadd.f32 %v2304_v32, %v2272_v57  ;;  %v3900_v39 = vadd.f32 %v3899_v47, %v3898_v5  ;;  %v6167_v57 = vmov 0  }
 0x2cc   : > { %v3901_v31 = vpop.f32.mrf.mxu1 }
 0x2cd   : > { %v2368_v36 = vmax.f32 %v2336_v3, 0.0  ;;  %v2273_v63 = vadd.f32 %v3900_v39, %v1656_v40  ;;  %v5725_v40 = vpop.f32.mrf.mxu0 }
 0x2ce   : > { %v3902_v46 = vpop.f32.mrf.mxu1 }
 0x2cf   : > { %v2399_v20 = vpack.c.bf16 %v2368_v36, %v2367_v29  ;;  %v3903_v54 = vadd.f32 %v3902_v46, %v3901_v31  ;;  %v2337_v32 = vadd.f32 %v2305_v2, %v2273_v63  ;;  %v2307_v2 = vld [vmem:[%s6133_s9 + $0x20] sm:$0xff]  ;;  %v1667_v36 = vadd.f32 %v3797_v34, %v5557_v22  ;;  %v5733_v56 = vpop.f32.mrf.mxu0  ;;  %v2308_v46 = vld [vmem:[%s6133_s9 + $0x28] sm:$0xff]  ;;  %v2309_v34 = vld [vmem:[%s6133_s9 + $0x30] sm:$0xff] }
 0x2d0   : > { %v3904_v59 = vpop.f32.mrf.mxu1  ;;  %v1672_v22 = vadd.f32 %v3800_v10, %v5561_v25  ;;  %v3806_v25 = vadd.f32 %v5620_v11, %v5616_v33  ;;  %v3809_v33 = vadd.f32 %v5628_v21, %v5624_v23 }
 0x2d1   : > { %v2274_v5 = vadd.f32 %v3903_v54, %v1659_v26  ;;  %3453 = vmatmul.mubr.msk.bf16.vlgmr.msra.gmra.mxu0 %vm2439_vm0, %v2399_v20  ;;  %v2369_v3 = vmax.f32 %v2337_v32, 0.0 }
 0x2d2   : > { %v3905_v18 = vpop.f32.mrf.mxu1  ;;  %2530 = vmatprep.mubr.bf16.mxu0 %v6167_v57 }
 0x2d3   : > { %v2338_v55 = vadd.f32 %v2306_v42, %v2274_v5  ;;  %v3906_v47 = vadd.f32 %v3905_v18, %v3904_v59  ;;  %v5743_v59 = vpop.f32.mrf.mxu0 }
 0x2d4   : > { %v3907_v28 = vpop.f32.mrf.mxu1 }
 0x2d5   : > { %v2370_v39 = vmax.f32 %v2338_v55, 0.0  ;;  %v2275_v31 = vadd.f32 %v3906_v47, %v1664_v24  ;;  %v1675_v47 = vadd.f32 %v3803_v49, %v5571_v6  ;;  %v5751_v7 = vpop.f32.mrf.mxu0  ;;  %v1680_v6 = vadd.f32 %v3806_v25, %v5575_v44  ;;  %v2312_v49 = vld [vmem:[%s6133_s9 + $0x48] sm:$0xff] }
 0x2d6   : > { %v3908_v29 = vpop.f32.mrf.mxu1  ;;  %v3812_v44 = vadd.f32 %v5636_v15, %v5632_v51  ;;  %v3815_v51 = vadd.f32 %v5644_v35, %v5640_v14 }
 0x2d7   : > { %v2400_v63 = vpack.c.bf16 %v2370_v39, %v2369_v3  ;;  %v3909_v12 = vadd.f32 %v3908_v29, %v3907_v28  ;;  %v2339_v30 = vadd.f32 %v2307_v2, %v2275_v31  ;;  %v2310_v3 = vld [vmem:[%s6133_s9 + $0x38] sm:$0xff]  ;;  %v5761_v10 = vpop.f32.mrf.mxu0 }
 0x2d8   : > { %v3910_v26 = vpop.f32.mrf.mxu1 }
 0x2d9   : > { %v2276_v20 = vadd.f32 %v3909_v12, %v1667_v36  ;;  %3454 = vmatmul.mubr.msk.bf16.gmra.mxu0 %vm2439_vm0, %v2400_v63  ;;  %v2371_v5 = vmax.f32 %v2339_v30, 0.0  ;;  %v2311_v30 = vld [vmem:[%s6133_s9 + $0x40] sm:$0xff]  ;;  %v5769_v21 = vpop.f32.mrf.mxu0 }
 0x2da   : > { %v3911_v54 = vpop.f32.mrf.mxu1  ;;  %2540 = vmatprep.mubr.bf16.mxu0 %v6167_v57 }
 0x2db   : > { %v2340_v0 = vadd.f32 %v2308_v46, %v2276_v20  ;;  %v3912_v42 = vadd.f32 %v3911_v54, %v3910_v26  ;;  %v1683_v54 = vadd.f32 %v3809_v33, %v5585_v58  ;;  %v1688_v58 = vadd.f32 %v3812_v44, %v5589_v60 }
 0x2dc   : > { %v3913_v32 = vpop.f32.mrf.mxu1  ;;  %v3818_v60 = vadd.f32 %v5652_v62, %v5648_v27  ;;  %v3821_v27 = vadd.f32 %v5660_v38, %v5656_v53 }
 0x2dd   : > { %v2372_v18 = vmax.f32 %v2340_v0, 0.0  ;;  %v2277_v24 = vadd.f32 %v3912_v42, %v1672_v22 }
 0x2de   : > { %v3914_v55 = vpop.f32.mrf.mxu1 }
 0x2df   : > { %v2401_v28 = vpack.c.bf16 %v2372_v18, %v2371_v5  ;;  %v3915_v41 = vadd.f32 %v3914_v55, %v3913_v32  ;;  %v2341_v31 = vadd.f32 %v2309_v34, %v2277_v24  ;;  %v5779_v24 = vpop.f32.mrf.mxu0 }
 0x2e0   : > { %v3916_v39 = vpop.f32.mrf.mxu1 }
 0x2e1   : > { %v2278_v2 = vadd.f32 %v3915_v41, %v1675_v47  ;;  %3455 = vmatmul.mubr.msk.bf16.gmra.mxu0 %vm2439_vm0, %v2401_v28  ;;  %v2373_v12 = vmax.f32 %v2341_v31, 0.0  ;;  %v2313_v28 = vld [vmem:[%s6133_s9 + $0x50] sm:$0xff]  ;;  %v5787_v35 = vpop.f32.mrf.mxu0  ;;  %v2314_v31 = vld [vmem:[%s6133_s9 + $0x58] sm:$0xff] }
 0x2e2   : > { %v3917_v29 = vpop.f32.mrf.mxu1  ;;  %2550 = vmatprep.mubr.bf16.mxu0 %v6167_v57 }
 0x2e3   : > { %v2342_v11 = vadd.f32 %v2310_v3, %v2278_v2  ;;  %v3918_v36 = vadd.f32 %v3917_v29, %v3916_v39  ;;  %v1691_v3 = vadd.f32 %v3815_v51, %v5599_v1  ;;  %v1696_v1 = vadd.f32 %v3818_v60, %v5603_v61 }
 0x2e4   : > { %v3919_v63 = vpop.f32.mrf.mxu1  ;;  %v3824_v61 = vadd.f32 %v5668_v17, %v5664_v48  ;;  %v3827_v48 = vadd.f32 %v5676_v43, %v5672_v13 }
 0x2e5   : > { %v2374_v46 = vmax.f32 %v2342_v11, 0.0  ;;  %v2279_v26 = vadd.f32 %v3918_v36, %v1680_v6  ;;  %v5797_v36 = vpop.f32.mrf.mxu0 }
 0x2e6   : > { %v3920_v20 = vpop.f32.mrf.mxu1 }
 0x2e7   : > { %v2402_v22 = vpack.c.bf16 %v2374_v46, %v2373_v12  ;;  %v3921_v23 = vadd.f32 %v3920_v20, %v3919_v63  ;;  %v2343_v42 = vadd.f32 %v2311_v30, %v2279_v26  ;;  %v2315_v30 = vld [vmem:[%s6133_s9 + $0x60] sm:$0xff]  ;;  %v5805_v38 = vpop.f32.mrf.mxu0 }
 0x2e8   : > { %v3922_v0 = vpop.f32.mrf.mxu1 }
 0x2e9   : > { %v2280_v32 = vadd.f32 %v3921_v23, %v1683_v54  ;;  %3456 = vmatmul.mubr.msk.bf16.gmra.mxu0 %vm2439_vm0, %v2402_v22  ;;  %v2375_v55 = vmax.f32 %v2343_v42, 0.0  ;;  %v1699_v54 = vadd.f32 %v3821_v27, %v5610_v4  ;;  %v2316_v22 = vld [vmem:[%s6133_s9 + $0x68] sm:$0xff]  ;;  %v1704_v4 = vadd.f32 %v3824_v61, %v5614_v50  ;;  %v2319_v27 = vld [vmem:[%s6133_s9 + $0x80] sm:$0xff] }
 0x2ea   : > { %v3923_v5 = vpop.f32.mrf.mxu1  ;;  %2560 = vmatprep.mubr.bf16.mxu0 %v6167_v57  ;;  %v3830_v50 = vadd.f32 %v5686_v8, %v5680_v9  ;;  %v6168_v8 = vld [vmem:[#allocation26_spill] sm:$0xff] }
 0x2eb   : > { %v2344_v15 = vadd.f32 %v2312_v49, %v2280_v32  ;;  %v3924_v18 = vadd.f32 %v3923_v5, %v3922_v0  ;;  %v5815_v5 = vpop.f32.mrf.mxu0  ;;  %v3833_v9 = vadd.f32 %v6168_v8, %v5691_v37  ;;  %v2323_v8 = vld [vmem:[%s6133_s9 + $0xa0] sm:$0xff] }
 0x2ec   : > { %v3925_v34 = vpop.f32.mrf.mxu1 }
 0x2ed   : > { %v2376_v47 = vmax.f32 %v2344_v15, 0.0  ;;  %v2281_v25 = vadd.f32 %v3924_v18, %v1688_v58  ;;  %v5823_v43 = vpop.f32.mrf.mxu0 }
 0x2ee   : > { %v3926_v41 = vpop.f32.mrf.mxu1 }
 0x2ef   : > { %v2403_v39 = vpack.c.bf16 %v2376_v47, %v2375_v55  ;;  %v3927_v14 = vadd.f32 %v3926_v41, %v3925_v34  ;;  %v2345_v29 = vadd.f32 %v2313_v28, %v2281_v25  ;;  %v2317_v34 = vld [vmem:[%s6133_s9 + $0x70] sm:$0xff]  ;;  %v1707_v47 = vadd.f32 %v3827_v48, %v5618_v16  ;;  %v2318_v28 = vld [vmem:[%s6133_s9 + $0x78] sm:$0xff] }
 0x2f0   : > { %v3928_v2 = vpop.f32.mrf.mxu1  ;;  %v1712_v16 = vadd.f32 %v3830_v50, %v5622_v52  ;;  %v3836_v52 = vadd.f32 %v5715_v45, %v5707_v19  ;;  %v3839_v19 = vadd.f32 %v5733_v56, %v5725_v40  ;;  %v2321_v48 = vld [vmem:[%s6133_s9 + $0x90] sm:$0xff] }
 0x2f1   : > { %v2282_v6 = vadd.f32 %v3927_v14, %v1691_v3  ;;  %3457 = vmatmul.mubr.msk.bf16.gmra.mxu0 %vm2439_vm0, %v2403_v39  ;;  %v2377_v12 = vmax.f32 %v2345_v29, 0.0 }
 0x2f2   : > { %v3929_v33 = vpop.f32.mrf.mxu1  ;;  %2570 = vmatprep.mubr.bf16.mxu0 %v6167_v57 }
 0x2f3   : > { %v2346_v62 = vadd.f32 %v2314_v31, %v2282_v6  ;;  %v3930_v11 = vadd.f32 %v3929_v33, %v3928_v2  ;;  %v5833_v2 = vpop.f32.mrf.mxu0 }
 0x2f4   : > { %v3931_v63 = vpop.f32.mrf.mxu1 }
 0x2f5   : > { %v2378_v46 = vmax.f32 %v2346_v62, 0.0  ;;  %v2283_v26 = vadd.f32 %v3930_v11, %v1696_v1  ;;  %v6169_v11 = vld [vmem:[#allocation11_spill] sm:$0xff] }
 0x2f6   : > { %v3932_v20 = vpop.f32.mrf.mxu1 }
 0x2f7   : > { %v2404_v44 = vpack.c.bf16 %v2378_v46, %v2377_v12  ;;  %v3933_v53 = vadd.f32 %v3932_v20, %v3931_v63  ;;  %v2347_v49 = vadd.f32 %v2315_v30, %v2283_v26  ;;  %v1715_v63 = vadd.f32 %v3833_v9, %v6169_v11  ;;  %v5841_v46 = vpop.f32.mrf.mxu0  ;;  %v2320_v26 = vld [vmem:[%s6133_s9 + $0x88] sm:$0xff] }
 0x2f8   : > { %v3934_v23 = vpop.f32.mrf.mxu1 }
 0x2f9   : > { %v2284_v0 = vadd.f32 %v3933_v53, %v1699_v54  ;;  %3458 = vmatmul.mubr.msk.bf16.gmra.mxu0 %vm2439_vm0, %v2404_v44  ;;  %v2379_v51 = vmax.f32 %v2347_v49, 0.0  ;;  %v6170_v44 = vld [vmem:[#allocation12_spill] sm:$0xff] }
 0x2fa   : > { %v3935_v42 = vpop.f32.mrf.mxu1  ;;  %2580 = vmatprep.mubr.bf16.mxu0 %v6167_v57  ;;  %v1720_v53 = vadd.f32 %v3836_v52, %v6170_v44 }
 0x2fb   : > { %v2348_v17 = vadd.f32 %v2316_v22, %v2284_v0  ;;  %v3936_v32 = vadd.f32 %v3935_v42, %v3934_v23  ;;  %v5851_v23 = vpop.f32.mrf.mxu0 }
 0x2fc   : > { %v3937_v58 = vpop.f32.mrf.mxu1 }
 0x2fd   : > { %v2380_v15 = vmax.f32 %v2348_v17, 0.0  ;;  %v2285_v18 = vadd.f32 %v3936_v32, %v1704_v4  ;;  %v6171_v32 = vld [vmem:[#allocation13_spill] sm:$0xff]  ;;  %v5859_v56 = vpop.f32.mrf.mxu0 }
 0x2fe   : > { %v3938_v55 = vpop.f32.mrf.mxu1 }
 0x2ff   : > { %v2405_v25 = vpack.c.bf16 %v2380_v15, %v2379_v51  ;;  %v3939_v13 = vadd.f32 %v3938_v55, %v3937_v58  ;;  %v2349_v3 = vadd.f32 %v2317_v34, %v2285_v18  ;;  %v1723_v58 = vadd.f32 %v3839_v19, %v6171_v32  ;;  %v2322_v18 = vld [vmem:[%s6133_s9 + $0x98] sm:$0xff] }
 0x300   : > { %v3940_v41 = vpop.f32.mrf.mxu1  ;;  %v3842_v51 = vadd.f32 %v5751_v7, %v5743_v59  ;;  %v3845_v59 = vadd.f32 %v5769_v21, %v5761_v10 }
 0x301   : > { %v2286_v60 = vadd.f32 %v3939_v13, %v1707_v47  ;;  %3459 = vmatmul.mubr.msk.bf16.gmra.mxu0 %vm2439_vm0, %v2405_v25  ;;  %v2381_v6 = vmax.f32 %v2349_v3, 0.0  ;;  %v6172_v25 = vld [vmem:[#allocation14_spill] sm:$0xff] }
 0x302   : > { %v3941_v39 = vpop.f32.mrf.mxu1  ;;  %2590 = vmatprep.mubr.bf16.mxu0 %v6167_v57  ;;  %v1728_v13 = vadd.f32 %v3842_v51, %v6172_v25 }
 0x303   : > { %v2350_v14 = vadd.f32 %v2318_v28, %v2286_v60  ;;  %v3942_v31 = vadd.f32 %v3941_v39, %v3940_v41  ;;  %v5869_v41 = vpop.f32.mrf.mxu0 }
 0x304   : > { %v3943_v29 = vpop.f32.mrf.mxu1 }
 0x305   : > { %v2382_v33 = vmax.f32 %v2350_v14, 0.0  ;;  %v2287_v1 = vadd.f32 %v3942_v31, %v1712_v16  ;;  %v6173_v14 = vld [vmem:[#allocation15_spill] sm:$0xff]  ;;  %v3862_v21 = vpop.f32.mrf.mxu0 }
 0x306   : > { %v3944_v62 = vpop.f32.mrf.mxu1  ;;  %v1731_v31 = vadd.f32 %v3845_v59, %v6173_v14 }
 0x307   : > { %v2406_v12 = vpack.c.bf16 %v2382_v33, %v2381_v6  ;;  %v3945_v37 = vadd.f32 %v3944_v62, %v3943_v29  ;;  %v2351_v20 = vadd.f32 %v2319_v27, %v2287_v1  ;;  %v3848_v29 = vadd.f32 %v5787_v35, %v5779_v24  ;;  %v2324_v33 = vld [vmem:[%s6133_s9 + $0xa8] sm:$0xff] }
 0x308   : > { %v3946_v30 = vpop.f32.mrf.mxu1  ;;  %v3851_v24 = vadd.f32 %v5805_v38, %v5797_v36  ;;  %v2326_v38 = vld [vmem:[%s6133_s9 + $0xb8] sm:$0xff] }
 0x309   : > { %v2288_v54 = vadd.f32 %v3945_v37, %v1715_v63  ;;  %3460 = vmatmul.mubr.msk.bf16.gmra.mxu0 %vm2439_vm0, %v2406_v12  ;;  %v2383_v0 = vmax.f32 %v2351_v20, 0.0  ;;  %v6174_v63 = vld [vmem:[#allocation16_spill] sm:$0xff]  ;;  %v3864_v37 = vpop.f32.mrf.mxu0 }
 0x30a   : > { %v3947_v61 = vpop.f32.mrf.mxu1  ;;  %2600 = vmatprep.mubr.bf16.mxu0 %v6167_v57  ;;  %v1736_v52 = vadd.f32 %v3848_v29, %v6174_v63 }
 0x30b   : > { %v2352_v45 = vadd.f32 %v2320_v26, %v2288_v54  ;;  %v3948_v22 = vadd.f32 %v3947_v61, %v3946_v30  ;;  %v2325_v61 = vld [vmem:[%s6133_s9 + $0xb0] sm:$0xff]  ;;  %v3865_v36 = vpop.f32.mrf.mxu0 }
 0x30c   : > { %v3949_v49 = vpop.f32.mrf.mxu1 }
 0x30d   : > { %v2384_v42 = vmax.f32 %v2352_v45, 0.0  ;;  %v2289_v4 = vadd.f32 %v3948_v22, %v1720_v53  ;;  %v6175_v53 = vld [vmem:[#allocation17_spill] sm:$0xff]  ;;  %v3854_v45 = vadd.f32 %v5823_v43, %v5815_v5  ;;  %v3857_v5 = vadd.f32 %v5841_v46, %v5833_v2  ;;  %v3867_v51 = vpop.f32.mrf.mxu0  ;;  %v2328_v46 = vld [vmem:[%s6133_s9 + $0xc8] sm:$0xff] }
 0x30e   : > { %v3950_v17 = vpop.f32.mrf.mxu1  ;;  %v1739_v19 = vadd.f32 %v3851_v24, %v6175_v53 }
 0x30f   : > { %v2407_v15 = vpack.c.bf16 %v2384_v42, %v2383_v0  ;;  %v3951_v40 = vadd.f32 %v3950_v17, %v3949_v49  ;;  %v2353_v55 = vadd.f32 %v2321_v48, %v2289_v4  ;;  %v6176_v17 = vld [vmem:[#allocation18_spill] sm:$0xff]  ;;  %v3868_v2 = vpop.f32.mrf.mxu0 }
 0x310   : > { %v3952_v34 = vpop.f32.mrf.mxu1  ;;  %v1744_v32 = vadd.f32 %v3854_v45, %v6176_v17 }
 0x311   : > { %v2290_v47 = vadd.f32 %v3951_v40, %v1723_v58  ;;  %3461 = vmatmul.mubr.msk.bf16.gmra.mxu0 %vm2439_vm0, %v2407_v15  ;;  %v2385_v60 = vmax.f32 %v2353_v55, 0.0  ;;  %v2327_v55 = vld [vmem:[%s6133_s9 + $0xc0] sm:$0xff]  ;;  %v3870_v14 = vpop.f32.mrf.mxu0 }
 0x312   : > { %v3953_v50 = vpop.f32.mrf.mxu1  ;;  %2610 = vmatprep.mubr.bf16.mxu0 %v6167_v57 }
 0x313   : > { %v2354_v7 = vadd.f32 %v2322_v18, %v2290_v47  ;;  %v3954_v28 = vadd.f32 %v3953_v50, %v3952_v34  ;;  %v6177_v50 = vld [vmem:[#allocation19_spill] sm:$0xff]  ;;  %v3871_v24 = vpop.f32.mrf.mxu0 }
 0x314   : > { %v3955_v3 = vpop.f32.mrf.mxu1  ;;  %v1747_v25 = vadd.f32 %v3857_v5, %v6177_v50 }
 0x315   : > { %v2386_v39 = vmax.f32 %v2354_v7, 0.0  ;;  %v2291_v16 = vadd.f32 %v3954_v28, %v1728_v13  ;;  %v3860_v13 = vadd.f32 %v5859_v56, %v5851_v23 }
 0x316   : > { %v3956_v9 = vpop.f32.mrf.mxu1 }
 0x317   : > { %v2408_v6 = vpack.c.bf16 %v2386_v39, %v2385_v60  ;;  %v3957_v10 = vadd.f32 %v3956_v9, %v3955_v3  ;;  %v2355_v27 = vadd.f32 %v2323_v8, %v2291_v16  ;;  %v6178_v16 = vld [vmem:[#allocation20_spill] sm:$0xff]  ;;  %v3863_v9 = vadd.f32 %v3862_v21, %v5869_v41  ;;  %v2330_v41 = vld [vmem:[%s6133_s9 + $0xd8] sm:$0xff] }
 0x318   : > { %v3958_v1 = vpop.f32.mrf.mxu1  ;;  %v1752_v8 = vadd.f32 %v3860_v13, %v6178_v16 }
 0x319   : > { %v2292_v62 = vadd.f32 %v3957_v10, %v1731_v31  ;;  %3462 = vmatmul.mubr.msk.bf16.gmra.mxu0 %vm2439_vm0, %v2408_v6  ;;  %v2387_v30 = vmax.f32 %v2355_v27, 0.0  ;;  %v6179_v27 = vld [vmem:[#allocation21_spill] sm:$0xff] }
 0x31a   : > { %v3959_v11 = vpop.f32.mrf.mxu1  ;;  %2620 = vmatprep.mubr.bf16.mxu0 %v6167_v57 }
 0x31b   : > { %v2356_v35 = vadd.f32 %v2324_v33, %v2292_v62  ;;  %v3960_v12 = vadd.f32 %v3959_v11, %v3958_v1  ;;  %v2329_v33 = vld [vmem:[%s6133_s9 + $0xd0] sm:$0xff]  ;;  %v1755_v62 = vadd.f32 %v3863_v9, %v6179_v27  ;;  %v3866_v11 = vadd.f32 %v3865_v36, %v3864_v37 }
 0x31c   : > { %v3961_v26 = vpop.f32.mrf.mxu1 }
 0x31d   : > { %v2388_v20 = vmax.f32 %v2356_v35, 0.0  ;;  %v2293_v54 = vadd.f32 %v3960_v12, %v1736_v52 }
 0x31e   : > { %v3962_v44 = vpop.f32.mrf.mxu1 }
 0x31f   : > { %v2409_v22 = vpack.c.bf16 %v2388_v20, %v2387_v30  ;;  %v3963_v49 = vadd.f32 %v3962_v44, %v3961_v26  ;;  %v2357_v42 = vadd.f32 %v2325_v61, %v2293_v54  ;;  %v6180_v30 = vld [vmem:[#allocation22_spill] sm:$0xff]  ;;  %v3869_v54 = vadd.f32 %v3868_v2, %v3867_v51  ;;  %v3873_v44 = vpop.f32.mrf.mxu0  ;;  %v6183_v2 = vld [vmem:[#allocation25_spill] sm:$0xff] }
 0x320   : > { %v3964_v0 = vpop.f32.mrf.mxu1  ;;  %v1760_v20 = vadd.f32 %v3866_v11, %v6180_v30 }
 0x321   : > { %v2294_v4 = vadd.f32 %v3963_v49, %v1739_v19  ;;  %3463 = vmatmul.mubr.msk.bf16.gmra.mxu0 %vm2439_vm0, %v2409_v22  ;;  %v2389_v40 = vmax.f32 %v2357_v42, 0.0  ;;  %v2331_v49 = vld [vmem:[%s6133_s9 + $0xe0] sm:$0xff]  ;;  %v3872_v42 = vadd.f32 %v3871_v24, %v3870_v14  ;;  %v3874_v17 = vpop.f32.mrf.mxu0 }
 0x322   : > { %v3965_v48 = vpop.f32.mrf.mxu1  ;;  %2630 = vmatprep.mubr.bf16.mxu0 %v6167_v57 }
 0x323   : > { %v2358_v43 = vadd.f32 %v2326_v38, %v2294_v4  ;;  %v3966_v58 = vadd.f32 %v3965_v48, %v3964_v0  ;;  %v6181_v38 = vld [vmem:[#allocation23_spill] sm:$0xff] }
 0x324   : > { %v3967_v15 = vpop.f32.mrf.mxu1  ;;  %v1763_v0 = vadd.f32 %v3869_v54, %v6181_v38 }
 0x325   : > { %v2390_v18 = vmax.f32 %v2358_v43, 0.0  ;;  %v2295_v34 = vadd.f32 %v3966_v58, %v1744_v32  ;;  %v2332_v32 = vld [vmem:[%s6133_s9 + $0xe8] sm:$0xff] }
 0x326   : > { %v3968_v47 = vpop.f32.mrf.mxu1 }
 0x327   : > { %v2410_v59 = vpack.c.bf16 %v2390_v18, %v2389_v40  ;;  %v3969_v7 = vadd.f32 %v3968_v47, %v3967_v15  ;;  %v2359_v3 = vadd.f32 %v2327_v55, %v2295_v34  ;;  %v6182_v15 = vld [vmem:[#allocation24_spill] sm:$0xff]  ;;  %v3875_v18 = vadd.f32 %v3874_v17, %v3873_v44 }
 0x328   : > { %v3970_v28 = vpop.f32.mrf.mxu1  ;;  %v1768_v40 = vadd.f32 %v3872_v42, %v6182_v15 }
 0x329   : > { %v2296_v60 = vadd.f32 %v3969_v7, %v1747_v25  ;;  %3464 = vmatmul.mubr.msk.bf16.gmra.mxu0 %vm2439_vm0, %v2410_v59  ;;  %v2391_v29 = vmax.f32 %v2359_v3, 0.0  ;;  %v2333_v59 = vld [vmem:[%s6133_s9 + $0xf0] sm:$0xff] }
 0x32a   : > { %v3971_v39 = vpop.f32.mrf.mxu1  ;;  %2640 = vmatprep.mubr.bf16.mxu0 %v6167_v57 }
 0x32b   : > { %v2360_v23 = vadd.f32 %v2328_v46, %v2296_v60  ;;  %v3972_v56 = vadd.f32 %v3971_v39, %v3970_v28  ;;  %v1771_v46 = vadd.f32 %v3875_v18, %v6183_v2  ;;  %v2334_v60 = vld [vmem:[%s6133_s9 + $0xf8] sm:$0xff] }
 0x32c   : > { %v3973_v31 = vpop.f32.mrf.mxu1 }
 0x32d   : > { %v2392_v6 = vmax.f32 %v2360_v23, 0.0  ;;  %v2297_v10 = vadd.f32 %v3972_v56, %v1752_v8 }
 0x32e   : > { %v3974_v1 = vpop.f32.mrf.mxu1 }
 0x32f   : > { %v2411_v63 = vpack.c.bf16 %v2392_v6, %v2391_v29  ;;  %v3975_v52 = vadd.f32 %v3974_v1, %v3973_v31  ;;  %v2361_v35 = vadd.f32 %v2329_v33, %v2297_v10 }
 0x330   : > { %v3976_v21 = vpop.f32.mrf.mxu1 }
 0x331   : > { %v2298_v12 = vadd.f32 %v3975_v52, %v1755_v62  ;;  %3465 = vmatmul.mubr.msk.bf16.gmra.mxu0 %vm2439_vm0, %v2411_v63  ;;  %v2393_v19 = vmax.f32 %v2361_v35, 0.0 }
 0x332   : > { %v3977_v26 = vpop.f32.mrf.mxu1  ;;  %2650 = vmatprep.mubr.bf16.mxu0 %v6167_v57 }
 0x333   : > { %v2362_v61 = vadd.f32 %v2330_v41, %v2298_v12  ;;  %v3978_v37 = vadd.f32 %v3977_v26, %v3976_v21 }
 0x334   : > { %v3979_v53 = vpop.f32.mrf.mxu1 }
 0x335   : > { %v2394_v45 = vmax.f32 %v2362_v61, 0.0  ;;  %v2299_v22 = vadd.f32 %v3978_v37, %v1760_v20 }
 0x336   : > { %v3980_v36 = vpop.f32.mrf.mxu1 }
 0x337   : > { %v2412_v4 = vpack.c.bf16 %v2394_v45, %v2393_v19  ;;  %v3981_v48 = vadd.f32 %v3980_v36, %v3979_v53  ;;  %v2363_v43 = vadd.f32 %v2331_v49, %v2299_v22 }
 0x338   : > { %v3982_v5 = vpop.f32.mrf.mxu1 }
 0x339   : > { %v2300_v58 = vadd.f32 %v3981_v48, %v1763_v0  ;;  %3466 = vmatmul.mubr.msk.bf16.gmra.mxu0 %vm2439_vm0, %v2412_v4  ;;  %v2395_v50 = vmax.f32 %v2363_v43, 0.0 }
 0x33a   : > { %v3983_v51 = vpop.f32.mrf.mxu1  ;;  %2660 = vmatprep.mubr.bf16.mxu0 %v6167_v57 }
 0x33b   : > { %v2364_v34 = vadd.f32 %v2332_v32, %v2300_v58  ;;  %v3984_v55 = vadd.f32 %v3983_v51, %v3982_v5 }
 0x33c   : > { %v3985_v47 = vpop.f32.mrf.mxu1 }
 0x33d   : > { %v2396_v25 = vmax.f32 %v2364_v34, 0.0  ;;  %v2301_v13 = vadd.f32 %v3984_v55, %v1768_v40 }
 0x33e   : > { %v3986_v7 = vpop.f32.mrf.mxu1 }
 0x33f   : > { %v2413_v28 = vpack.c.bf16 %v2396_v25, %v2395_v50  ;;  %v3987_v3 = vadd.f32 %v3986_v7, %v3985_v47  ;;  %v2365_v39 = vadd.f32 %v2333_v59, %v2301_v13  ;;  %v4525_v59 = vld [vmem:[%s4848_s11] sm:$0xff] }
 0x341   : > { %v2302_v16 = vadd.f32 %v3987_v3, %v1771_v46  ;;  %3467 = vmatmul.mubr.msk.bf16.gmra.mxu0 %vm2439_vm0, %v2413_v28  ;;  %v2397_v9 = vmax.f32 %v2365_v39, 0.0  ;;  %v4526_v39 = vld [vmem:[%s4848_s11 + $0x8] sm:$0xff] }
 0x342   : > { %2670 = vmatprep.mubr.bf16.mxu0 %v6167_v57 }
 0x343   : > { %v2366_v8 = vadd.f32 %v2334_v60, %v2302_v16 }
 0x345   : > { %v2398_v23 = vmax.f32 %v2366_v8, 0.0 }
 0x347   : > { %v2414_v56 = vpack.c.bf16 %v2398_v23, %v2397_v9 }
 0x349   : > { %3468 = vmatmul.mubr.msk.bf16.gmra.mxu0 %vm2439_vm0, %v2414_v56 }
 0x391   : > { %v2522_v14 = vpop.f32.mrf.mxu0 }
 0x392   : > { %v3469_v31 = vmul.f32 -1.442695, %v2522_v14 }
 0x393   : > { %v2524_v29 = vpop.f32.mrf.mxu0 }
 0x394   : > { %4269 = vpow2.f32 %v3469_v31  ;;  %v3470_v6 = vmul.f32 -1.442695, %v2524_v29  ;;  %v4527_v31 = vld [vmem:[%s4848_s11 + $0x10] sm:$0xff] }
 0x395   : > { %v2526_v10 = vpop.f32.mrf.mxu0 }
 0x396   : > { %4271 = vpow2.f32 %v3470_v6  ;;  %v3471_v33 = vmul.f32 -1.442695, %v2526_v10 }
 0x397   : > { %v2528_v1 = vpop.f32.mrf.mxu0 }
 0x398   : > { %4273 = vpow2.f32 %v3471_v33  ;;  %v3472_v27 = vmul.f32 -1.442695, %v2528_v1 }
 0x399   : > { %v2532_v62 = vpop.f32.mrf.mxu0 }
 0x39a   : > { %4275 = vpow2.f32 %v3472_v27  ;;  %v3473_v57 = vmul.f32 -1.442695, %v2532_v62  ;;  %v4528_v62 = vld [vmem:[%s4848_s11 + $0x18] sm:$0xff] }
 0x39b   : > { %v2534_v11 = vpop.f32.mrf.mxu0 }
 0x39c   : > { %4277 = vpow2.f32 %v3473_v57  ;;  %v3474_v63 = vmul.f32 -1.442695, %v2534_v11 }
 0x39d   : > { %v2536_v52 = vpop.f32.mrf.mxu0 }
 0x39e   : > { %4279 = vpow2.f32 %v3474_v63  ;;  %v3475_v24 = vmul.f32 -1.442695, %v2536_v52 }
 0x39f   : > { %v2538_v41 = vpop.f32.mrf.mxu0 }
 0x3a0   : > { %4281 = vpow2.f32 %v3475_v24  ;;  %v3476_v21 = vmul.f32 -1.442695, %v2538_v41 }
 0x3a1   : > { %v4270_v35 = vpop.eup %4269  ;;  %v2542_v12 = vpop.f32.mrf.mxu0 }
 0x3a2   : > { %v2873_v26 = vadd.f32 1.0, %v4270_v35  ;;  %4283 = vpow2.f32 %v3476_v21  ;;  %v3477_v30 = vmul.f32 -1.442695, %v2542_v12  ;;  %v4529_v21 = vld [vmem:[%s4848_s11 + $0x20] sm:$0xff] }
 0x3a3   : > { %v4272_v20 = vpop.eup %4271  ;;  %v2544_v54 = vpop.f32.mrf.mxu0 }
 0x3a4   : > { %4285 = vrcp.f32 %v2873_v26  ;;  %v2874_v61 = vadd.f32 1.0, %v4272_v20  ;;  %v3478_v37 = vmul.f32 -1.442695, %v2544_v54 }
 0x3a5   : > { %v4274_v44 = vpop.eup %4273  ;;  %4287 = vpow2.f32 %v3477_v30  ;;  %v2546_v53 = vpop.f32.mrf.mxu0 }
 0x3a6   : > { %4289 = vrcp.f32 %v2874_v61  ;;  %v2875_v19 = vadd.f32 1.0, %v4274_v44  ;;  %v3479_v45 = vmul.f32 -1.442695, %v2546_v53  ;;  %v4530_v61 = vld [vmem:[%s4848_s11 + $0x28] sm:$0xff] }
 0x3a7   : > { %v4276_v22 = vpop.eup %4275  ;;  %4291 = vpow2.f32 %v3478_v37  ;;  %v2548_v49 = vpop.f32.mrf.mxu0 }
 0x3a8   : > { %4293 = vrcp.f32 %v2875_v19  ;;  %v2876_v36 = vadd.f32 1.0, %v4276_v22  ;;  %v3480_v38 = vmul.f32 -1.442695, %v2548_v49  ;;  %v4531_v49 = vld [vmem:[%s4848_s11 + $0x30] sm:$0xff] }
 0x3a9   : > { %v4278_v0 = vpop.eup %4277  ;;  %4295 = vpow2.f32 %v3479_v45  ;;  %v2552_v42 = vpop.f32.mrf.mxu0 }
 0x3aa   : > { %4297 = vrcp.f32 %v2876_v36  ;;  %v2877_v4 = vadd.f32 1.0, %v4278_v0  ;;  %v3481_v48 = vmul.f32 -1.442695, %v2552_v42 }
 0x3ab   : > { %v4280_v17 = vpop.eup %4279  ;;  %4299 = vpow2.f32 %v3480_v38  ;;  %v2554_v32 = vpop.f32.mrf.mxu0 }
 0x3ac   : > { %4301 = vrcp.f32 %v2877_v4  ;;  %v2878_v5 = vadd.f32 1.0, %v4280_v17  ;;  %v3482_v43 = vmul.f32 -1.442695, %v2554_v32  ;;  %v4532_v17 = vld [vmem:[%s4848_s11 + $0x38] sm:$0xff] }
 0x3ad   : > { %v4282_v58 = vpop.eup %4281  ;;  %4303 = vpow2.f32 %v3481_v48  ;;  %v2556_v51 = vpop.f32.mrf.mxu0 }
 0x3ae   : > { %4305 = vrcp.f32 %v2878_v5  ;;  %v2879_v15 = vadd.f32 1.0, %v4282_v58  ;;  %v3483_v40 = vmul.f32 -1.442695, %v2556_v51 }
 0x3af   : > { %v4284_v18 = vpop.eup %4283  ;;  %4307 = vpow2.f32 %v3482_v43  ;;  %v2558_v34 = vpop.f32.mrf.mxu0 }
 0x3b0   : > { %4309 = vrcp.f32 %v2879_v15  ;;  %v2880_v55 = vadd.f32 1.0, %v4284_v18  ;;  %v3484_v47 = vmul.f32 -1.442695, %v2558_v34 }
 0x3b1   : > { %v4286_v50 = vpop.eup %4285  ;;  %4311 = vpow2.f32 %v3483_v40  ;;  %v2562_v25 = vpop.f32.mrf.mxu0 }
 0x3b2   : > { %v4288_v13 = vpop.eup %4287  ;;  %v3065_v7 = vmul.f32 %v4525_v59, %v4286_v50  ;;  %4313 = vrcp.f32 %v2880_v55  ;;  %v3485_v2 = vmul.f32 -1.442695, %v2562_v25  ;;  %v4533_v55 = vld [vmem:[%s4848_s11 + $0x40] sm:$0xff] }
 0x3b3   : > { %v4290_v46 = vpop.eup %4289  ;;  %v2881_v28 = vadd.f32 1.0, %v4288_v13  ;;  %4315 = vpow2.f32 %v3484_v47  ;;  %v2564_v3 = vpop.f32.mrf.mxu0 }
 0x3b4   : > { %v4292_v60 = vpop.eup %4291  ;;  %3129 = vst [vmem:[%s5945_s15] sm:$0xff] %v3065_v7  ;;  %v3066_v16 = vmul.f32 %v4526_v39, %v4290_v46  ;;  %4317 = vpow2.f32 %v3485_v2  ;;  %v3486_v8 = vmul.f32 -1.442695, %v2564_v3  ;;  %v4534_v2 = vld [vmem:[%s4848_s11 + $0x48] sm:$0xff] }
 0x3b5   : > { %v4294_v9 = vpop.eup %4293  ;;  %4319 = vrcp.f32 %v2881_v28  ;;  %v2882_v23 = vadd.f32 1.0, %v4292_v60  ;;  %v2566_v56 = vpop.f32.mrf.mxu0 }
 0x3b6   : > { %v4296_v14 = vpop.eup %4295  ;;  %3130 = vst [vmem:[%s5945_s15 + $0x8] sm:$0xff] %v3066_v16  ;;  %v3067_v29 = vmul.f32 %v4527_v31, %v4294_v9  ;;  %4321 = vpow2.f32 %v3486_v8  ;;  %v3487_v6 = vmul.f32 -1.442695, %v2566_v56  ;;  %v4535_v8 = vld [vmem:[%s4848_s11 + $0x50] sm:$0xff] }
 0x3b7   : > { %v4298_v10 = vpop.eup %4297  ;;  %4323 = vrcp.f32 %v2882_v23  ;;  %v2883_v33 = vadd.f32 1.0, %v4296_v14  ;;  %v2568_v1 = vpop.f32.mrf.mxu0 }
 0x3b8   : > { %v4300_v27 = vpop.eup %4299  ;;  %3131 = vst [vmem:[%s5945_s15 + $0x10] sm:$0xff] %v3067_v29  ;;  %v3068_v57 = vmul.f32 %v4528_v62, %v4298_v10  ;;  %4325 = vpow2.f32 %v3487_v6  ;;  %v3488_v11 = vmul.f32 -1.442695, %v2568_v1  ;;  %v4536_v6 = vld [vmem:[%s4848_s11 + $0x58] sm:$0xff] }
 0x3b9   : > { %v4302_v63 = vpop.eup %4301  ;;  %4327 = vrcp.f32 %v2883_v33  ;;  %v2884_v52 = vadd.f32 1.0, %v4300_v27  ;;  %v2572_v24 = vpop.f32.mrf.mxu0 }
 0x3ba   : > { %v4304_v41 = vpop.eup %4303  ;;  %3132 = vst [vmem:[%s5945_s15 + $0x18] sm:$0xff] %v3068_v57  ;;  %v3069_v35 = vmul.f32 %v4529_v21, %v4302_v63  ;;  %4329 = vpow2.f32 %v3488_v11  ;;  %v3489_v12 = vmul.f32 -1.442695, %v2572_v24  ;;  %v4537_v11 = vld [vmem:[%s4848_s11 + $0x60] sm:$0xff] }
 0x3bb   : > { %v4306_v26 = vpop.eup %4305  ;;  %4331 = vrcp.f32 %v2884_v52  ;;  %v2885_v30 = vadd.f32 1.0, %v4304_v41  ;;  %v2574_v20 = vpop.f32.mrf.mxu0 }
 0x3bc   : > { %v4308_v54 = vpop.eup %4307  ;;  %3133 = vst [vmem:[%s5945_s15 + $0x20] sm:$0xff] %v3069_v35  ;;  %v3070_v37 = vmul.f32 %v4530_v61, %v4306_v26  ;;  %4333 = vpow2.f32 %v3489_v12  ;;  %v3490_v44 = vmul.f32 -1.442695, %v2574_v20  ;;  %v4538_v12 = vld [vmem:[%s4848_s11 + $0x68] sm:$0xff] }
 0x3bd   : > { %v4310_v53 = vpop.eup %4309  ;;  %4335 = vrcp.f32 %v2885_v30  ;;  %v2886_v19 = vadd.f32 1.0, %v4308_v54  ;;  %v2576_v45 = vpop.f32.mrf.mxu0 }
 0x3be   : > { %v4312_v22 = vpop.eup %4311  ;;  %3134 = vst [vmem:[%s5945_s15 + $0x28] sm:$0xff] %v3070_v37  ;;  %v3071_v36 = vmul.f32 %v4531_v49, %v4310_v53  ;;  %4337 = vpow2.f32 %v3490_v44  ;;  %v3491_v38 = vmul.f32 -1.442695, %v2576_v45  ;;  %v4539_v44 = vld [vmem:[%s4848_s11 + $0x70] sm:$0xff] }
 0x3bf   : > { %v4314_v0 = vpop.eup %4313  ;;  %4339 = vrcp.f32 %v2886_v19  ;;  %v2887_v42 = vadd.f32 1.0, %v4312_v22  ;;  %v2578_v4 = vpop.f32.mrf.mxu0 }
 0x3c0   : > { %v4316_v48 = vpop.eup %4315  ;;  %3135 = vst [vmem:[%s5945_s15 + $0x30] sm:$0xff] %v3071_v36  ;;  %v3072_v32 = vmul.f32 %v4532_v17, %v4314_v0  ;;  %4341 = vpow2.f32 %v3491_v38  ;;  %v3492_v5 = vmul.f32 -1.442695, %v2578_v4  ;;  %v4540_v38 = vld [vmem:[%s4848_s11 + $0x78] sm:$0xff] }
 0x3c1   : > { %v4318_v43 = vpop.eup %4317  ;;  %4343 = vrcp.f32 %v2887_v42  ;;  %v2888_v58 = vadd.f32 1.0, %v4316_v48  ;;  %v2582_v51 = vpop.f32.mrf.mxu0  ;;  %v4541_v48 = vld [vmem:[%s4848_s11 + $0x80] sm:$0xff] }
 0x3c2   : > { %v4320_v15 = vpop.eup %4319  ;;  %3136 = vst [vmem:[%s5945_s15 + $0x38] sm:$0xff] %v3072_v32  ;;  %v2889_v40 = vadd.f32 1.0, %v4318_v43  ;;  %4345 = vpow2.f32 %v3492_v5  ;;  %v3493_v18 = vmul.f32 -1.442695, %v2582_v51 }
 0x3c3   : > { %v4322_v34 = vpop.eup %4321  ;;  %v3073_v47 = vmul.f32 %v4533_v55, %v4320_v15  ;;  %4347 = vrcp.f32 %v2888_v58  ;;  %v2584_v50 = vpop.f32.mrf.mxu0  ;;  %v4542_v15 = vld [vmem:[%s4848_s11 + $0x88] sm:$0xff] }
 0x3c4   : > { %v4324_v25 = vpop.eup %4323  ;;  %4349 = vrcp.f32 %v2889_v40  ;;  %v2890_v13 = vadd.f32 1.0, %v4322_v34  ;;  %v3494_v59 = vmul.f32 -1.442695, %v2584_v50 }
 0x3c5   : > { %v4326_v7 = vpop.eup %4325  ;;  %3137 = vst [vmem:[%s5945_s15 + $0x40] sm:$0xff] %v3073_v47  ;;  %v3074_v46 = vmul.f32 %v4534_v2, %v4324_v25  ;;  %4351 = vpow2.f32 %v3493_v18  ;;  %v2586_v28 = vpop.f32.mrf.mxu0  ;;  %v4543_v25 = vld [vmem:[%s4848_s11 + $0x90] sm:$0xff] }
 0x3c6   : > { %v4328_v3 = vpop.eup %4327  ;;  %4353 = vrcp.f32 %v2890_v13  ;;  %v2891_v60 = vadd.f32 1.0, %v4326_v7  ;;  %v3495_v39 = vmul.f32 -1.442695, %v2586_v28 }
 0x3c7   : > { %v4330_v16 = vpop.eup %4329  ;;  %3138 = vst [vmem:[%s5945_s15 + $0x48] sm:$0xff] %v3074_v46  ;;  %v3075_v9 = vmul.f32 %v4535_v8, %v4328_v3  ;;  %4355 = vpow2.f32 %v3494_v59  ;;  %v2588_v23 = vpop.f32.mrf.mxu0  ;;  %v4544_v3 = vld [vmem:[%s4848_s11 + $0x98] sm:$0xff] }
 0x3c8   : > { %v4332_v56 = vpop.eup %4331  ;;  %4357 = vrcp.f32 %v2891_v60  ;;  %v2892_v14 = vadd.f32 1.0, %v4330_v16  ;;  %v3496_v31 = vmul.f32 -1.442695, %v2588_v23 }
 0x3c9   : > { %v4334_v29 = vpop.eup %4333  ;;  %3139 = vst [vmem:[%s5945_s15 + $0x50] sm:$0xff] %v3075_v9  ;;  %v3076_v10 = vmul.f32 %v4536_v6, %v4332_v56  ;;  %4359 = vpow2.f32 %v3495_v39  ;;  %v2592_v33 = vpop.f32.mrf.mxu0  ;;  %v4545_v56 = vld [vmem:[%s4848_s11 + $0xa0] sm:$0xff] }
 0x3ca   : > { %v4336_v1 = vpop.eup %4335  ;;  %4361 = vrcp.f32 %v2892_v14  ;;  %v2893_v27 = vadd.f32 1.0, %v4334_v29  ;;  %v3497_v62 = vmul.f32 -1.442695, %v2592_v33 }
 0x3cb   : > { %v4338_v57 = vpop.eup %4337  ;;  %3140 = vst [vmem:[%s5945_s15 + $0x58] sm:$0xff] %v3076_v10  ;;  %v3077_v63 = vmul.f32 %v4537_v11, %v4336_v1  ;;  %4363 = vpow2.f32 %v3496_v31  ;;  %v2594_v52 = vpop.f32.mrf.mxu0  ;;  %v4546_v1 = vld [vmem:[%s4848_s11 + $0xa8] sm:$0xff] }
 0x3cc   : > { %v4340_v24 = vpop.eup %4339  ;;  %4365 = vrcp.f32 %v2893_v27  ;;  %v2894_v41 = vadd.f32 1.0, %v4338_v57  ;;  %v3498_v21 = vmul.f32 -1.442695, %v2594_v52 }
 0x3cd   : > { %v4342_v35 = vpop.eup %4341  ;;  %3141 = vst [vmem:[%s5945_s15 + $0x60] sm:$0xff] %v3077_v63  ;;  %v3078_v26 = vmul.f32 %v4538_v12, %v4340_v24  ;;  %4367 = vpow2.f32 %v3497_v62  ;;  %v2596_v30 = vpop.f32.mrf.mxu0  ;;  %v4547_v24 = vld [vmem:[%s4848_s11 + $0xb0] sm:$0xff] }
 0x3ce   : > { %v4344_v20 = vpop.eup %4343  ;;  %4369 = vrcp.f32 %v2894_v41  ;;  %v2895_v54 = vadd.f32 1.0, %v4342_v35  ;;  %v3499_v61 = vmul.f32 -1.442695, %v2596_v30 }
 0x3cf   : > { %v4346_v37 = vpop.eup %4345  ;;  %3142 = vst [vmem:[%s5945_s15 + $0x68] sm:$0xff] %v3078_v26  ;;  %v3079_v53 = vmul.f32 %v4539_v44, %v4344_v20  ;;  %4371 = vpow2.f32 %v3498_v21  ;;  %v2598_v19 = vpop.f32.mrf.mxu0  ;;  %v4548_v20 = vld [vmem:[%s4848_s11 + $0xb8] sm:$0xff] }
 0x3d0   : > { %v4348_v45 = vpop.eup %4347  ;;  %4373 = vrcp.f32 %v2895_v54  ;;  %v2896_v22 = vadd.f32 1.0, %v4346_v37  ;;  %v3500_v49 = vmul.f32 -1.442695, %v2598_v19 }
 0x3d1   : > { %v4350_v36 = vpop.eup %4349  ;;  %3143 = vst [vmem:[%s5945_s15 + $0x70] sm:$0xff] %v3079_v53  ;;  %v3080_v0 = vmul.f32 %v4540_v38, %v4348_v45  ;;  %4375 = vpow2.f32 %v3499_v61  ;;  %v2602_v42 = vpop.f32.mrf.mxu0 }
 0x3d2   : > { %v4352_v4 = vpop.eup %4351  ;;  %v3081_v17 = vmul.f32 %v4541_v48, %v4350_v36  ;;  %4377 = vrcp.f32 %v2896_v22  ;;  %v3501_v32 = vmul.f32 -1.442695, %v2602_v42  ;;  %v4549_v36 = vld [vmem:[%s4848_s11 + $0xc0] sm:$0xff] }
 0x3d3   : > { %v4354_v5 = vpop.eup %4353  ;;  %3144 = vst [vmem:[%s5945_s15 + $0x78] sm:$0xff] %v3080_v0  ;;  %v2897_v43 = vadd.f32 1.0, %v4352_v4  ;;  %4379 = vpow2.f32 %v3500_v49  ;;  %v2604_v58 = vpop.f32.mrf.mxu0 }
 0x3d4   : > { %v4356_v51 = vpop.eup %4355  ;;  %3145 = vst [vmem:[%s5945_s15 + $0x80] sm:$0xff] %v3081_v17  ;;  %v3082_v40 = vmul.f32 %v4542_v15, %v4354_v5  ;;  %4381 = vpow2.f32 %v3501_v32  ;;  %v3502_v18 = vmul.f32 -1.442695, %v2604_v58  ;;  %v4550_v32 = vld [vmem:[%s4848_s11 + $0xc8] sm:$0xff] }
 0x3d5   : > { %v4358_v34 = vpop.eup %4357  ;;  %4383 = vrcp.f32 %v2897_v43  ;;  %v2898_v55 = vadd.f32 1.0, %v4356_v51  ;;  %v2606_v47 = vpop.f32.mrf.mxu0 }
 0x3d6   : > { %v4360_v50 = vpop.eup %4359  ;;  %3146 = vst [vmem:[%s5945_s15 + $0x88] sm:$0xff] %v3082_v40  ;;  %v3083_v13 = vmul.f32 %v4543_v25, %v4358_v34  ;;  %4385 = vpow2.f32 %v3502_v18  ;;  %v3503_v59 = vmul.f32 -1.442695, %v2606_v47  ;;  %v4551_v18 = vld [vmem:[%s4848_s11 + $0xd0] sm:$0xff] }
 0x3d7   : > { %v4362_v7 = vpop.eup %4361  ;;  %4387 = vrcp.f32 %v2898_v55  ;;  %v2899_v2 = vadd.f32 1.0, %v4360_v50  ;;  %v2608_v46 = vpop.f32.mrf.mxu0 }
 0x3d8   : > { %v4364_v28 = vpop.eup %4363  ;;  %3147 = vst [vmem:[%s5945_s15 + $0x90] sm:$0xff] %v3083_v13  ;;  %v3084_v60 = vmul.f32 %v4544_v3, %v4362_v7  ;;  %4389 = vpow2.f32 %v3503_v59  ;;  %v3504_v39 = vmul.f32 -1.442695, %v2608_v46  ;;  %v4552_v59 = vld [vmem:[%s4848_s11 + $0xd8] sm:$0xff] }
 0x3d9   : > { %v4366_v16 = vpop.eup %4365  ;;  %4391 = vrcp.f32 %v2899_v2  ;;  %v2900_v8 = vadd.f32 1.0, %v4364_v28  ;;  %v2612_v9 = vpop.f32.mrf.mxu0 }
 0x3da   : > { %v4368_v23 = vpop.eup %4367  ;;  %3148 = vst [vmem:[%s5945_s15 + $0x98] sm:$0xff] %v3084_v60  ;;  %v3085_v14 = vmul.f32 %v4545_v56, %v4366_v16  ;;  %4393 = vpow2.f32 %v3504_v39  ;;  %v3505_v31 = vmul.f32 -1.442695, %v2612_v9  ;;  %v4553_v39 = vld [vmem:[%s4848_s11 + $0xe0] sm:$0xff] }
 0x3db   : > { %v4370_v29 = vpop.eup %4369  ;;  %4395 = vrcp.f32 %v2900_v8  ;;  %v2901_v6 = vadd.f32 1.0, %v4368_v23  ;;  %v2614_v10 = vpop.f32.mrf.mxu0 }
 0x3dc   : > { %v4372_v33 = vpop.eup %4371  ;;  %3149 = vst [vmem:[%s5945_s15 + $0xa0] sm:$0xff] %v3085_v14  ;;  %v3086_v27 = vmul.f32 %v4546_v1, %v4370_v29  ;;  %4397 = vpow2.f32 %v3505_v31  ;;  %v3506_v62 = vmul.f32 -1.442695, %v2614_v10  ;;  %v4554_v31 = vld [vmem:[%s4848_s11 + $0xe8] sm:$0xff] }
 0x3dd   : > { %v4374_v57 = vpop.eup %4373  ;;  %4399 = vrcp.f32 %v2901_v6  ;;  %v2902_v11 = vadd.f32 1.0, %v4372_v33  ;;  %v2616_v63 = vpop.f32.mrf.mxu0 }
 0x3de   : > { %v4376_v52 = vpop.eup %4375  ;;  %3150 = vst [vmem:[%s5945_s15 + $0xa8] sm:$0xff] %v3086_v27  ;;  %v3087_v41 = vmul.f32 %v4547_v24, %v4374_v57  ;;  %4401 = vpow2.f32 %v3506_v62  ;;  %v3507_v21 = vmul.f32 -1.442695, %v2616_v63  ;;  %v4555_v62 = vld [vmem:[%s4848_s11 + $0xf0] sm:$0xff] }
 0x3df   : > { %v4378_v35 = vpop.eup %4377  ;;  %4403 = vrcp.f32 %v2902_v11  ;;  %v2903_v12 = vadd.f32 1.0, %v4376_v52  ;;  %v2618_v26 = vpop.f32.mrf.mxu0 }
 0x3e0   : > { %v4380_v30 = vpop.eup %4379  ;;  %3151 = vst [vmem:[%s5945_s15 + $0xb0] sm:$0xff] %v3087_v41  ;;  %v3088_v54 = vmul.f32 %v4548_v20, %v4378_v35  ;;  %4405 = vpow2.f32 %v3507_v21  ;;  %v3508_v61 = vmul.f32 -1.442695, %v2618_v26  ;;  %v4556_v21 = vld [vmem:[%s4848_s11 + $0xf8] sm:$0xff] }
 0x3e1   : > { %v4382_v37 = vpop.eup %4381  ;;  %4407 = vrcp.f32 %v2903_v12  ;;  %v2904_v44 = vadd.f32 1.0, %v4380_v30  ;;  %v2622_v53 = vpop.f32.mrf.mxu0  ;;  %v4557_v30 = vld [vmem:[%s4848_s11 + $0x100] sm:$0xff] }
 0x3e2   : > { %v4384_v19 = vpop.eup %4383  ;;  %3152 = vst [vmem:[%s5945_s15 + $0xb8] sm:$0xff] %v3088_v54  ;;  %v2905_v45 = vadd.f32 1.0, %v4382_v37  ;;  %4409 = vpow2.f32 %v3508_v61  ;;  %v3509_v22 = vmul.f32 -1.442695, %v2622_v53 }
 0x3e3   : > { %v4386_v49 = vpop.eup %4385  ;;  %v3089_v38 = vmul.f32 %v4549_v36, %v4384_v19  ;;  %4411 = vrcp.f32 %v2904_v44  ;;  %v2624_v0 = vpop.f32.mrf.mxu0  ;;  %v4558_v19 = vld [vmem:[%s4848_s11 + $0x108] sm:$0xff] }
 0x3e4   : > { %v4388_v42 = vpop.eup %4387  ;;  %4413 = vrcp.f32 %v2905_v45  ;;  %v2906_v4 = vadd.f32 1.0, %v4386_v49  ;;  %v3510_v48 = vmul.f32 -1.442695, %v2624_v0 }
 0x3e5   : > { %v4390_v17 = vpop.eup %4389  ;;  %3153 = vst [vmem:[%s5945_s15 + $0xc0] sm:$0xff] %v3089_v38  ;;  %v3090_v5 = vmul.f32 %v4550_v32, %v4388_v42  ;;  %4415 = vpow2.f32 %v3509_v22  ;;  %v2626_v43 = vpop.f32.mrf.mxu0  ;;  %v4559_v42 = vld [vmem:[%s4848_s11 + $0x110] sm:$0xff] }
 0x3e6   : > { %v4392_v58 = vpop.eup %4391  ;;  %4417 = vrcp.f32 %v2906_v4  ;;  %v2907_v51 = vadd.f32 1.0, %v4390_v17  ;;  %v3511_v15 = vmul.f32 -1.442695, %v2626_v43 }
 0x3e7   : > { %v4394_v40 = vpop.eup %4393  ;;  %3154 = vst [vmem:[%s5945_s15 + $0xc8] sm:$0xff] %v3090_v5  ;;  %v3091_v34 = vmul.f32 %v4551_v18, %v4392_v58  ;;  %4419 = vpow2.f32 %v3510_v48  ;;  %v2628_v55 = vpop.f32.mrf.mxu0  ;;  %v4560_v58 = vld [vmem:[%s4848_s11 + $0x118] sm:$0xff] }
 0x3e8   : > { %v4396_v47 = vpop.eup %4395  ;;  %4421 = vrcp.f32 %v2907_v51  ;;  %v2908_v50 = vadd.f32 1.0, %v4394_v40  ;;  %v3512_v25 = vmul.f32 -1.442695, %v2628_v55 }
 0x3e9   : > { %v4398_v13 = vpop.eup %4397  ;;  %3155 = vst [vmem:[%s5945_s15 + $0xd0] sm:$0xff] %v3091_v34  ;;  %v3092_v7 = vmul.f32 %v4552_v59, %v4396_v47  ;;  %4423 = vpow2.f32 %v3511_v15  ;;  %v2632_v2 = vpop.f32.mrf.mxu0  ;;  %v4561_v47 = vld [vmem:[%s4848_s11 + $0x120] sm:$0xff] }
 0x3ea   : > { %v4400_v46 = vpop.eup %4399  ;;  %4425 = vrcp.f32 %v2908_v50  ;;  %v2909_v28 = vadd.f32 1.0, %v4398_v13  ;;  %v3513_v3 = vmul.f32 -1.442695, %v2632_v2 }
 0x3eb   : > { %v4402_v60 = vpop.eup %4401  ;;  %3156 = vst [vmem:[%s5945_s15 + $0xd8] sm:$0xff] %v3092_v7  ;;  %v3093_v16 = vmul.f32 %v4553_v39, %v4400_v46  ;;  %4427 = vpow2.f32 %v3512_v25  ;;  %v2634_v8 = vpop.f32.mrf.mxu0  ;;  %v4562_v46 = vld [vmem:[%s4848_s11 + $0x128] sm:$0xff] }
 0x3ec   : > { %v4404_v9 = vpop.eup %4403  ;;  %4429 = vrcp.f32 %v2909_v28  ;;  %v2910_v23 = vadd.f32 1.0, %v4402_v60  ;;  %v3514_v56 = vmul.f32 -1.442695, %v2634_v8 }
 0x3ed   : > { %v4406_v14 = vpop.eup %4405  ;;  %3157 = vst [vmem:[%s5945_s15 + $0xe0] sm:$0xff] %v3093_v16  ;;  %v3094_v29 = vmul.f32 %v4554_v31, %v4404_v9  ;;  %4431 = vpow2.f32 %v3513_v3  ;;  %v2636_v6 = vpop.f32.mrf.mxu0  ;;  %v4563_v9 = vld [vmem:[%s4848_s11 + $0x130] sm:$0xff] }
 0x3ee   : > { %v4408_v10 = vpop.eup %4407  ;;  %4433 = vrcp.f32 %v2910_v23  ;;  %v2911_v33 = vadd.f32 1.0, %v4406_v14  ;;  %v3515_v1 = vmul.f32 -1.442695, %v2636_v6 }
 0x3ef   : > { %v4410_v27 = vpop.eup %4409  ;;  %3158 = vst [vmem:[%s5945_s15 + $0xe8] sm:$0xff] %v3094_v29  ;;  %v3095_v57 = vmul.f32 %v4555_v62, %v4408_v10  ;;  %4435 = vpow2.f32 %v3514_v56  ;;  %v2638_v11 = vpop.f32.mrf.mxu0  ;;  %v4564_v10 = vld [vmem:[%s4848_s11 + $0x138] sm:$0xff] }
 0x3f0   : > { %v4412_v63 = vpop.eup %4411  ;;  %4437 = vrcp.f32 %v2911_v33  ;;  %v2912_v52 = vadd.f32 1.0, %v4410_v27  ;;  %v3516_v24 = vmul.f32 -1.442695, %v2638_v11 }
 0x3f1   : > { %v4414_v41 = vpop.eup %4413  ;;  %3159 = vst [vmem:[%s5945_s15 + $0xf0] sm:$0xff] %v3095_v57  ;;  %v3096_v35 = vmul.f32 %v4556_v21, %v4412_v63  ;;  %4439 = vpow2.f32 %v3515_v1  ;;  %v2642_v12 = vpop.f32.mrf.mxu0 }
 0x3f2   : > { %v4416_v26 = vpop.eup %4415  ;;  %v3097_v20 = vmul.f32 %v4557_v30, %v4414_v41  ;;  %4441 = vrcp.f32 %v2912_v52  ;;  %v3517_v54 = vmul.f32 -1.442695, %v2642_v12  ;;  %v4565_v41 = vld [vmem:[%s4848_s11 + $0x140] sm:$0xff] }
 0x3f3   : > { %v4418_v61 = vpop.eup %4417  ;;  %3160 = vst [vmem:[%s5945_s15 + $0xf8] sm:$0xff] %v3096_v35  ;;  %v2913_v37 = vadd.f32 1.0, %v4416_v26  ;;  %4443 = vpow2.f32 %v3516_v24  ;;  %v2644_v44 = vpop.f32.mrf.mxu0 }
 0x3f4   : > { %v4420_v53 = vpop.eup %4419  ;;  %3161 = vst [vmem:[%s5945_s15 + $0x100] sm:$0xff] %v3097_v20  ;;  %v3098_v45 = vmul.f32 %v4558_v19, %v4418_v61  ;;  %4445 = vpow2.f32 %v3517_v54  ;;  %v3518_v22 = vmul.f32 -1.442695, %v2644_v44  ;;  %v4566_v54 = vld [vmem:[%s4848_s11 + $0x148] sm:$0xff] }
 0x3f5   : > { %v4422_v49 = vpop.eup %4421  ;;  %4447 = vrcp.f32 %v2913_v37  ;;  %v2914_v36 = vadd.f32 1.0, %v4420_v53  ;;  %v2646_v38 = vpop.f32.mrf.mxu0 }
 0x3f6   : > { %v4424_v0 = vpop.eup %4423  ;;  %3162 = vst [vmem:[%s5945_s15 + $0x108] sm:$0xff] %v3098_v45  ;;  %v3099_v4 = vmul.f32 %v4559_v42, %v4422_v49  ;;  %4449 = vpow2.f32 %v3518_v22  ;;  %v3519_v48 = vmul.f32 -1.442695, %v2646_v38  ;;  %v4567_v22 = vld [vmem:[%s4848_s11 + $0x150] sm:$0xff] }
 0x3f7   : > { %v4426_v17 = vpop.eup %4425  ;;  %4451 = vrcp.f32 %v2914_v36  ;;  %v2915_v32 = vadd.f32 1.0, %v4424_v0  ;;  %v2648_v5 = vpop.f32.mrf.mxu0 }
 0x3f8   : > { %v4428_v43 = vpop.eup %4427  ;;  %3163 = vst [vmem:[%s5945_s15 + $0x110] sm:$0xff] %v3099_v4  ;;  %v3100_v51 = vmul.f32 %v4560_v58, %v4426_v17  ;;  %4453 = vpow2.f32 %v3519_v48  ;;  %v3520_v15 = vmul.f32 -1.442695, %v2648_v5  ;;  %v4568_v48 = vld [vmem:[%s4848_s11 + $0x158] sm:$0xff] }
 0x3f9   : > { %v4430_v40 = vpop.eup %4429  ;;  %4455 = vrcp.f32 %v2915_v32  ;;  %v2916_v18 = vadd.f32 1.0, %v4428_v43  ;;  %v2652_v34 = vpop.f32.mrf.mxu0 }
 0x3fa   : > { %v4432_v55 = vpop.eup %4431  ;;  %3164 = vst [vmem:[%s5945_s15 + $0x118] sm:$0xff] %v3100_v51  ;;  %v3101_v50 = vmul.f32 %v4561_v47, %v4430_v40  ;;  %4457 = vpow2.f32 %v3520_v15  ;;  %v3521_v25 = vmul.f32 -1.442695, %v2652_v34  ;;  %v4569_v15 = vld [vmem:[%s4848_s11 + $0x160] sm:$0xff] }
 0x3fb   : > { %v4434_v13 = vpop.eup %4433  ;;  %4459 = vrcp.f32 %v2916_v18  ;;  %v2917_v59 = vadd.f32 1.0, %v4432_v55  ;;  %v2654_v7 = vpop.f32.mrf.mxu0 }
 0x3fc   : > { %v4436_v2 = vpop.eup %4435  ;;  %3165 = vst [vmem:[%s5945_s15 + $0x120] sm:$0xff] %v3101_v50  ;;  %v3102_v28 = vmul.f32 %v4562_v46, %v4434_v13  ;;  %4461 = vpow2.f32 %v3521_v25  ;;  %v3522_v3 = vmul.f32 -1.442695, %v2654_v7  ;;  %v4570_v25 = vld [vmem:[%s4848_s11 + $0x168] sm:$0xff] }
 0x3fd   : > { %v4438_v60 = vpop.eup %4437  ;;  %4463 = vrcp.f32 %v2917_v59  ;;  %v2918_v39 = vadd.f32 1.0, %v4436_v2  ;;  %v2656_v16 = vpop.f32.mrf.mxu0 }
 0x3fe   : > { %v4440_v8 = vpop.eup %4439  ;;  %3166 = vst [vmem:[%s5945_s15 + $0x128] sm:$0xff] %v3102_v28  ;;  %v3103_v23 = vmul.f32 %v4563_v9, %v4438_v60  ;;  %4465 = vpow2.f32 %v3522_v3  ;;  %v3523_v56 = vmul.f32 -1.442695, %v2656_v16  ;;  %v4571_v3 = vld [vmem:[%s4848_s11 + $0x170] sm:$0xff] }
 0x3ff   : > { %v4442_v14 = vpop.eup %4441  ;;  %4467 = vrcp.f32 %v2918_v39  ;;  %v2919_v31 = vadd.f32 1.0, %v4440_v8  ;;  %v2658_v29 = vpop.f32.mrf.mxu0 }
 0x400   : > { %v4444_v6 = vpop.eup %4443  ;;  %3167 = vst [vmem:[%s5945_s15 + $0x130] sm:$0xff] %v3103_v23  ;;  %v3104_v33 = vmul.f32 %v4564_v10, %v4442_v14  ;;  %4469 = vpow2.f32 %v3523_v56  ;;  %v3524_v1 = vmul.f32 -1.442695, %v2658_v29  ;;  %v4572_v56 = vld [vmem:[%s4848_s11 + $0x178] sm:$0xff]  ;;  %v4573_v29 = vld [vmem:[%s4848_s11 + $0x180] sm:$0xff] }
 0x401   : > { %v4446_v27 = vpop.eup %4445  ;;  %4471 = vrcp.f32 %v2919_v31  ;;  %v2920_v62 = vadd.f32 1.0, %v4444_v6  ;;  %v2662_v57 = vpop.f32.mrf.mxu0 }
 0x402   : > { %v4448_v11 = vpop.eup %4447  ;;  %3168 = vst [vmem:[%s5945_s15 + $0x138] sm:$0xff] %v3104_v33  ;;  %v2921_v63 = vadd.f32 1.0, %v4446_v27  ;;  %4473 = vpow2.f32 %v3524_v1  ;;  %v3525_v52 = vmul.f32 -1.442695, %v2662_v57  ;;  %v4574_v27 = vld [vmem:[%s4848_s11 + $0x188] sm:$0xff] }
 0x403   : > { %v4450_v24 = vpop.eup %4449  ;;  %v3105_v21 = vmul.f32 %v4565_v41, %v4448_v11  ;;  %4475 = vrcp.f32 %v2920_v62  ;;  %v2664_v35 = vpop.f32.mrf.mxu0 }
 0x404   : > { %v4452_v12 = vpop.eup %4451  ;;  %4477 = vrcp.f32 %v2921_v63  ;;  %v2922_v26 = vadd.f32 1.0, %v4450_v24  ;;  %v3526_v30 = vmul.f32 -1.442695, %v2664_v35 }
 0x405   : > { %v4454_v20 = vpop.eup %4453  ;;  %3169 = vst [vmem:[%s5945_s15 + $0x140] sm:$0xff] %v3105_v21  ;;  %v3106_v61 = vmul.f32 %v4566_v54, %v4452_v12  ;;  %4479 = vpow2.f32 %v3525_v52  ;;  %v2666_v37 = vpop.f32.mrf.mxu0  ;;  %v4575_v52 = vld [vmem:[%s4848_s11 + $0x190] sm:$0xff]  ;;  %v4576_v12 = vld [vmem:[%s4848_s11 + $0x198] sm:$0xff] }
 0x406   : > { %v4456_v44 = vpop.eup %4455  ;;  %4481 = vrcp.f32 %v2922_v26  ;;  %v2923_v53 = vadd.f32 1.0, %v4454_v20  ;;  %v3527_v19 = vmul.f32 -1.442695, %v2666_v37 }
 0x407   : > { %v4458_v45 = vpop.eup %4457  ;;  %3170 = vst [vmem:[%s5945_s15 + $0x148] sm:$0xff] %v3106_v61  ;;  %v3107_v49 = vmul.f32 %v4567_v22, %v4456_v44  ;;  %4483 = vpow2.f32 %v3526_v30  ;;  %v2668_v36 = vpop.f32.mrf.mxu0  ;;  %v4577_v61 = vld [vmem:[%s4848_s11 + $0x1a0] sm:$0xff] }
 0x408   : > { %v4460_v38 = vpop.eup %4459  ;;  %4485 = vrcp.f32 %v2923_v53  ;;  %v2924_v0 = vadd.f32 1.0, %v4458_v45  ;;  %v3528_v42 = vmul.f32 -1.442695, %v2668_v36  ;;  %v4578_v45 = vld [vmem:[%s4848_s11 + $0x1a8] sm:$0xff] }
 0x409   : > { %v4462_v4 = vpop.eup %4461  ;;  %3171 = vst [vmem:[%s5945_s15 + $0x150] sm:$0xff] %v3107_v49  ;;  %v3108_v17 = vmul.f32 %v4568_v48, %v4460_v38  ;;  %4487 = vpow2.f32 %v3527_v19  ;;  %v2672_v32 = vpop.f32.mrf.mxu0 }
 0x40a   : > { %v4464_v5 = vpop.eup %4463  ;;  %4489 = vrcp.f32 %v2924_v0  ;;  %v2925_v43 = vadd.f32 1.0, %v4462_v4  ;;  %v3529_v58 = vmul.f32 -1.442695, %v2672_v32  ;;  %v4579_v0 = vld [vmem:[%s4848_s11 + $0x1b0] sm:$0xff]  ;;  %v4580_v32 = vld [vmem:[%s4848_s11 + $0x1b8] sm:$0xff] }
 0x40b   : > { %v4466_v51 = vpop.eup %4465  ;;  %3172 = vst [vmem:[%s5945_s15 + $0x158] sm:$0xff] %v3108_v17  ;;  %v3109_v40 = vmul.f32 %v4569_v15, %v4464_v5  ;;  %4491 = vpow2.f32 %v3528_v42  ;;  %v2674_v18 = vpop.f32.mrf.mxu0 }
 0x40c   : > { %v4468_v34 = vpop.eup %4467  ;;  %4493 = vrcp.f32 %v2925_v43  ;;  %v2926_v55 = vadd.f32 1.0, %v4466_v51  ;;  %v3530_v47 = vmul.f32 -1.442695, %v2674_v18  ;;  %v4581_v51 = vld [vmem:[%s4848_s11 + $0x1c0] sm:$0xff]  ;;  %v4582_v18 = vld [vmem:[%s4848_s11 + $0x1c8] sm:$0xff] }
 0x40d   : > { %v4470_v50 = vpop.eup %4469  ;;  %3173 = vst [vmem:[%s5945_s15 + $0x160] sm:$0xff] %v3109_v40  ;;  %v3110_v13 = vmul.f32 %v4570_v25, %v4468_v34  ;;  %4495 = vpow2.f32 %v3529_v58  ;;  %v2676_v59 = vpop.f32.mrf.mxu0 }
 0x40e   : > { %v4472_v7 = vpop.eup %4471  ;;  %4497 = vrcp.f32 %v2926_v55  ;;  %v2927_v2 = vadd.f32 1.0, %v4470_v50  ;;  %v3531_v46 = vmul.f32 -1.442695, %v2676_v59 }
 0x40f   : > { %v4474_v28 = vpop.eup %4473  ;;  %3174 = vst [vmem:[%s5945_s15 + $0x168] sm:$0xff] %v3110_v13  ;;  %v3111_v60 = vmul.f32 %v4571_v3, %v4472_v7  ;;  %4499 = vpow2.f32 %v3530_v47  ;;  %v2678_v39 = vpop.f32.mrf.mxu0  ;;  %v4583_v47 = vld [vmem:[%s4848_s11 + $0x1d0] sm:$0xff]  ;;  %v4584_v13 = vld [vmem:[%s4848_s11 + $0x1d8] sm:$0xff]  ;;  %v4586_v3 = vld [vmem:[%s4848_s11 + $0x1e8] sm:$0xff] }
 0x410   : > { %v4476_v16 = vpop.eup %4475  ;;  %4501 = vrcp.f32 %v2927_v2  ;;  %v2928_v8 = vadd.f32 1.0, %v4474_v28  ;;  %v3532_v9 = vmul.f32 -1.442695, %v2678_v39  ;;  %v4585_v2 = vld [vmem:[%s4848_s11 + $0x1e0] sm:$0xff] }
 0x411   : > { %v4478_v23 = vpop.eup %4477  ;;  %3175 = vst [vmem:[%s5945_s15 + $0x170] sm:$0xff] %v3111_v60  ;;  %v3112_v14 = vmul.f32 %v4572_v56, %v4476_v16  ;;  %4503 = vpow2.f32 %v3531_v46  ;;  %v4587_v16 = vld [vmem:[%s4848_s11 + $0x1f0] sm:$0xff] }
 0x412   : > { %v4480_v31 = vpop.eup %4479  ;;  %v3113_v6 = vmul.f32 %v4573_v29, %v4478_v23  ;;  %4505 = vrcp.f32 %v2928_v8  ;;  %v4588_v23 = vld [vmem:[%s4848_s11 + $0x1f8] sm:$0xff] }
 0x413   : > { %v4482_v10 = vpop.eup %4481  ;;  %3176 = vst [vmem:[%s5945_s15 + $0x178] sm:$0xff] %v3112_v14  ;;  %v2929_v33 = vadd.f32 1.0, %v4480_v31  ;;  %4507 = vpow2.f32 %v3532_v9 }
 0x414   : > { %v4484_v1 = vpop.eup %4483  ;;  %3177 = vst [vmem:[%s5945_s15 + $0x180] sm:$0xff] %v3113_v6  ;;  %v3114_v62 = vmul.f32 %v4574_v27, %v4482_v10 }
 0x415   : > { %v4486_v57 = vpop.eup %4485  ;;  %4509 = vrcp.f32 %v2929_v33  ;;  %v2930_v11 = vadd.f32 1.0, %v4484_v1 }
 0x416   : > { %v4488_v63 = vpop.eup %4487  ;;  %3178 = vst [vmem:[%s5945_s15 + $0x188] sm:$0xff] %v3114_v62  ;;  %v3115_v24 = vmul.f32 %v4575_v52, %v4486_v57 }
 0x417   : > { %v4490_v41 = vpop.eup %4489  ;;  %4511 = vrcp.f32 %v2930_v11  ;;  %v2931_v21 = vadd.f32 1.0, %v4488_v63 }
 0x418   : > { %v4492_v35 = vpop.eup %4491  ;;  %3179 = vst [vmem:[%s5945_s15 + $0x190] sm:$0xff] %v3115_v24  ;;  %v3116_v26 = vmul.f32 %v4576_v12, %v4490_v41 }
 0x419   : > { %v4494_v30 = vpop.eup %4493  ;;  %4513 = vrcp.f32 %v2931_v21  ;;  %v2932_v20 = vadd.f32 1.0, %v4492_v35 }
 0x41a   : > { %v4496_v54 = vpop.eup %4495  ;;  %3180 = vst [vmem:[%s5945_s15 + $0x198] sm:$0xff] %v3116_v26  ;;  %v3117_v37 = vmul.f32 %v4577_v61, %v4494_v30 }
 0x41b   : > { %v4498_v44 = vpop.eup %4497  ;;  %4515 = vrcp.f32 %v2932_v20  ;;  %v2933_v53 = vadd.f32 1.0, %v4496_v54 }
 0x41c   : > { %v4500_v19 = vpop.eup %4499  ;;  %3181 = vst [vmem:[%s5945_s15 + $0x1a0] sm:$0xff] %v3117_v37  ;;  %v3118_v22 = vmul.f32 %v4578_v45, %v4498_v44 }
 0x41d   : > { %v4502_v49 = vpop.eup %4501  ;;  %4517 = vrcp.f32 %v2933_v53  ;;  %v2934_v36 = vadd.f32 1.0, %v4500_v19 }
 0x41e   : > { %v4504_v38 = vpop.eup %4503  ;;  %3182 = vst [vmem:[%s5945_s15 + $0x1a8] sm:$0xff] %v3118_v22  ;;  %v3119_v42 = vmul.f32 %v4579_v0, %v4502_v49 }
 0x41f   : > { %v4506_v4 = vpop.eup %4505  ;;  %4519 = vrcp.f32 %v2934_v36  ;;  %v2935_v48 = vadd.f32 1.0, %v4504_v38 }
 0x420   : > { %v4508_v17 = vpop.eup %4507  ;;  %3183 = vst [vmem:[%s5945_s15 + $0x1b0] sm:$0xff] %v3119_v42  ;;  %v3120_v5 = vmul.f32 %v4580_v32, %v4506_v4 }
 0x421   : > { %4521 = vrcp.f32 %v2935_v48  ;;  %v2936_v43 = vadd.f32 1.0, %v4508_v17 }
 0x422   : > { %v4510_v58 = vpop.eup %4509  ;;  %3184 = vst [vmem:[%s5945_s15 + $0x1b8] sm:$0xff] %v3120_v5 }
 0x423   : > { %v3121_v15 = vmul.f32 %v4581_v51, %v4510_v58  ;;  %4523 = vrcp.f32 %v2936_v43 }
 0x424   : > { %v4512_v40 = vpop.eup %4511 }
 0x425   : > { %3185 = vst [vmem:[%s5945_s15 + $0x1c0] sm:$0xff] %v3121_v15  ;;  %v3122_v34 = vmul.f32 %v4582_v18, %v4512_v40 }
 0x426   : > { %v4514_v55 = vpop.eup %4513 }
 0x427   : > { %3186 = vst [vmem:[%s5945_s15 + $0x1c8] sm:$0xff] %v3122_v34  ;;  %v3123_v50 = vmul.f32 %v4583_v47, %v4514_v55 }
 0x428   : > { %v4516_v25 = vpop.eup %4515 }
 0x429   : > { %3187 = vst [vmem:[%s5945_s15 + $0x1d0] sm:$0xff] %v3123_v50  ;;  %v3124_v59 = vmul.f32 %v4584_v13, %v4516_v25 }
 0x42a   : > { %v4518_v7 = vpop.eup %4517 }
 0x42b   : > { %3188 = vst [vmem:[%s5945_s15 + $0x1d8] sm:$0xff] %v3124_v59  ;;  %v3125_v46 = vmul.f32 %v4585_v2, %v4518_v7 }
 0x42c   : > { %v4520_v28 = vpop.eup %4519 }
 0x42d   : > { %3189 = vst [vmem:[%s5945_s15 + $0x1e0] sm:$0xff] %v3125_v46  ;;  %v3126_v60 = vmul.f32 %v4586_v3, %v4520_v28 }
 0x42e   : > { %v4522_v39 = vpop.eup %4521 }
 0x42f   : > { %3190 = vst [vmem:[%s5945_s15 + $0x1e8] sm:$0xff] %v3126_v60  ;;  %v3127_v8 = vmul.f32 %v4587_v16, %v4522_v39 }
 0x430   : > { %v4524_v9 = vpop.eup %4523 }
 0x431   : > { %3191 = vst [vmem:[%s5945_s15 + $0x1f0] sm:$0xff] %v3127_v8  ;;  %v3128_v56 = vmul.f32 %v4588_v23, %v4524_v9 }
 0x433   : > { %3192 = vst [vmem:[%s5945_s15 + $0x1f8] sm:$0xff] %v3128_v56 }
 0x434   : > { %4630 = shalt.err (!%p4627_p10)
}
 0x435   : > { %s4631_s11 = scalar_lea.hbm %s6076_s22, 8192  ;;  %s4635_s15 = scalar_lea.hbm %s6134_s10, 16384 }
 0x436   : > { %p4632_p0 = scmp.ne.s32.totalorder %s6076_s22, %s4631_s11  ;;  %p4636_p1 = scmp.lt.s32.totalorder %s6076_s22, %s6134_s10 }
 0x437   : > { %p4637_p3 = scmp.lt.s32.totalorder %s4635_s15, %s4631_s11 }
 0x438   : > { %p4633_p2 = pnand %p4632_p0, %p6184_p12 }
 0x439   : > { %p4638_p6 = por %p4637_p3, %p4636_p1 }
 0x43a   : > { %p4634_p9 = pneg %p4633_p2 }
 0x43c   : > { %p4639_p11 = pnand %p4638_p6, %p4634_p9 }
 0x43e   : > { %4642 = shalt.err (!%p4639_p11)
}
 0x43f   : > { %s4688_s23 = smov 256   ;;  %s4689_s12 = smov 16  }
 0x440   : > { %4006 = dma.vmem_to_hbm [thread:$0]  (%p6184_p12), %s6078_s24, 8192, %s6076_s22, %s3194_s17, %s4688_s23, %s4688_s23, %s4689_s12  }
 0x441 PF: > { %s3222_s20 = sand.u32 1, %s4669_s13   ;;  %p6185_p13 = scmp.ne.s32.totalorder %s6148_s26, 0 }
 0x442   : > { %p6186_p4 = scmp.ge.s32.totalorder %s4681_s16, 2  ;;  %s3223_s21 = scalar_lea.sflag [#allocation4], %s3222_s20 }
 0x444   : > { %p4013_p5 = pnand %p6186_p4, %p6185_p13 }
 0x446   : > { %p4014_p7 = pneg %p4013_p5 }
 0x448   : > { %4664 = dma.done.wait (%p4014_p7), %s3223_s21, 8192  }
 0x449   : > { %4666 = vsyncadd (%p4014_p7), %s3223_s21, 4294959104  ;;  %s6187_s16 = sld [smem:[#allocation9_spill]]  ;;  %s6190_s13 = smov %s4673_s14 }
 0x44a   : > { %s6188_s27 = sld [smem:[#allocation8_spill]] }
 0x44b   : > { %s6189_s15 = sld [smem:[#allocation10_spill]] }
 0x44f   : > { %p23_p8 = scmp.ge.s32.totalorder %s6187_s16, 4  }
 0x450   : > { %s6191_s14 = smov %s6188_s27 }
 0x451   :  { %25 = sbr.rel (!%p23_p8) target bundleno = 5 (0x5), region = 105 }
 0x456   :  { %3228 = vsyncpa [#allocation3], 1 }
 0x457   :  { %3230 = vsyncpa [#allocation3 + $0x1], 1 }
 0x458   :  { %3231 = vsyncpa [#allocation4], 1 }
 0x459   :  { %3233 = vsyncpa [#allocation4 + $0x1], 1 }

</bundles_post_ra>
